<compile_context>
chip_gen: v7x
topology: tpu7x:2x2x1
jax: 0.10.0
libtpu: 0.0.40
codegen_flags: <defaults>
</compile_context>

<pallas_src>
import functools

import jax
import jax.numpy as jnp
from jax import lax
from jax.experimental import pallas as pl
from jax.experimental.pallas import tpu as pltpu

state_dim = 4
hidden_dim = 64
action_dim = 2


def qnetwork_kernel(x_ref, w1_ref, b1_ref, w2_ref, b2_ref, o_ref, *, chunk):
    # x_ref : [state_dim,  b_tile]     f32  (streamed, batch on lanes)
    # w1_ref: [hidden_dim, state_dim]  f32  (resident, PyTorch layout)
    # b1_ref: [hidden_dim, 1]          f32  (resident)
    # w2_ref: [action_dim, hidden_dim] bf16 (resident, PyTorch layout)
    # b2_ref: [action_dim, 1]          f32  (resident)
    # o_ref : [action_dim, b_tile]     f32  (lane-dense output)
    b_tile = x_ref.shape[1]
    n_chunks = b_tile // chunk                         # static python int

    w1 = w1_ref[...]                                   # [64, 4] f32 (tiny)
    w2 = w2_ref[...]                                   # [2, 64] bf16

    # Hoist every loop-invariant lane-broadcast out of the chunk loop
    # (JAX does not CSE broadcast_in_dim; per-chunk re-broadcasts repeat VALU work).
    w1b = [jnp.broadcast_to(w1[:, k:k + 1], (hidden_dim, chunk))
           for k in range(state_dim)]                  # 4 x [64, chunk]
    b1b = jnp.broadcast_to(b1_ref[...], (hidden_dim, chunk))
    b2b = jnp.broadcast_to(b2_ref[...], (action_dim, chunk))

    def body(j, carry):
        c0 = pl.multiple_of(j * chunk, chunk)          # lane-aligned chunk offset
        xc = x_ref[:, pl.ds(c0, chunk)]                # [4, chunk] f32

        # fc1: contraction dim is only 4 -> 4 broadcast FMAs on the VPU
        # (MXU would be ~97% zero padding). f32 accumulate, bias folded in.
        h = b1b + w1b[0] * xc[0:1, :]
        for k in range(1, state_dim):
            h = h + w1b[k] * xc[k:k + 1, :]
        h = jnp.maximum(h, 0.0)                        # ReLU on the VPU

        # fc2: K = 64 on the otherwise-idle MXU; bf16 operands, f32 accumulation.
        out = jnp.dot(w2, h.astype(jnp.bfloat16),
                      preferred_element_type=jnp.float32)   # [2, chunk] f32
        o_ref[:, pl.ds(c0, chunk)] = out + b2b
        return carry

    lax.fori_loop(0, n_chunks, body, 0)


def qnetwork_forward_t(xT, w1, b1, w2, b2, *, b_tile=65536, chunk=2048):
    """Transposed-layout forward: xT [state_dim, B] f32 -> [action_dim, B] f32.

    Zero-relayout entry point: producers that supply the state batch-on-lanes
    (and consumers accepting [action_dim, B]) avoid the extra XLA transpose passes
    of `qnetwork_forward`.
    """
    assert xT.shape[0] == state_dim
    B = xT.shape[1]

    chunk = max(128, (int(chunk) // 128) * 128)
    # Pad the batch to a multiple of the in-kernel chunk (a no-op for typical
    # power-of-two RL batches) so the chunk loop tiles the block exactly.
    b_pad = -(-B // chunk) * chunk
    if b_pad != B:
        xT = jnp.pad(xT, ((0, 0), (0, b_pad - B)))

    bt = min(max(chunk, (int(b_tile) // chunk) * chunk), b_pad)
    n_tiles = -(-b_pad // bt)   # last tile may be partial; Pallas masks the writeback

    const = lambda i: (0, 0)    # resident weights: same block every grid step
    out_t = pl.pallas_call(
        functools.partial(qnetwork_kernel, chunk=chunk),
        out_shape=jax.ShapeDtypeStruct((action_dim, b_pad), jnp.float32),
        grid=(n_tiles,),
        in_specs=[
            pl.BlockSpec((state_dim, bt), lambda i: (0, i)),   # x tile (streamed)
            pl.BlockSpec((hidden_dim, state_dim), const),      # w1
            pl.BlockSpec((hidden_dim, 1), const),              # b1
            pl.BlockSpec((action_dim, hidden_dim), const),     # w2
            pl.BlockSpec((action_dim, 1), const),              # b2
        ],
        out_specs=pl.BlockSpec((action_dim, bt), lambda i: (0, i)),
        compiler_params=pltpu.CompilerParams(
            dimension_semantics=("parallel",),     # shard batch tiles across TCs (v7x)
            vmem_limit_bytes=32 * 1024 * 1024,     # headroom on v5e; safe on v7x (64 MiB)
        ),
    )(xT.astype(jnp.float32),
      w1.astype(jnp.float32),
      b1.reshape(hidden_dim, 1).astype(jnp.float32),
      w2.astype(jnp.bfloat16),
      b2.reshape(action_dim, 1).astype(jnp.float32))

    return out_t[:, :B] if b_pad != B else out_t


def qnetwork_forward(state, w1, b1, w2, b2, **kwargs):
    """PyTorch-facing forward: state [B, state_dim] f32 -> [B, action_dim] f32.

    NOTE: the two transposes here are extra XLA HBM passes; latency-critical callers
    should use qnetwork_forward_t directly with the batch-on-lanes layout.
    """
    return qnetwork_forward_t(state.T, w1, b1, w2, b2, **kwargs).T


def init_params(key):
    # PyTorch-style uniform init (bounds = 1/sqrt(fan_in)), native nn.Linear layouts.
    k1, k2, k3, k4 = jax.random.split(key, 4)
    bound1 = 1.0 / (state_dim ** 0.5)
    bound2 = 1.0 / (hidden_dim ** 0.5)
    w1 = jax.random.uniform(k1, (hidden_dim, state_dim), jnp.float32, -bound1, bound1)
    b1 = jax.random.uniform(k2, (hidden_dim,), jnp.float32, -bound1, bound1)
    w2 = jax.random.uniform(k3, (action_dim, hidden_dim), jnp.float32, -bound2, bound2)
    b2 = jax.random.uniform(k4, (action_dim,), jnp.float32, -bound2, bound2)
    return w1, b1, w2, b2


if __name__ == "__main__":
    key = jax.random.PRNGKey(0)
    k_in, k_param = jax.random.split(key)

    batch = 2
    state = jax.random.normal(k_in, (batch, state_dim), jnp.float32)
    w1, b1, w2, b2 = init_params(k_param)

    out = qnetwork_forward(state, w1, b1, w2, b2)
    jax.block_until_ready(out)
    assert out.shape == (batch, action_dim)

    # Matching-precision reference: f32 fc1 (same as PyTorch), bf16 fc2 operands with
    # f32 accumulation (same as the kernel's MXU path).
    h_ref = jnp.maximum(state @ w1.T + b1, 0.0)
    ref = jnp.dot(h_ref.astype(jnp.bfloat16), w2.astype(jnp.bfloat16).T,
                  preferred_element_type=jnp.float32) + b2
    assert jnp.allclose(out, ref, atol=1e-3, rtol=1e-3), "mismatch vs matched-precision reference"

    # Loose check against the pure-f32 PyTorch math (fc2 weights run in bf16 on the MXU).
    ref_f32 = h_ref @ w2.T + b2
    assert jnp.allclose(out, ref_f32, atol=5e-2, rtol=5e-2), "mismatch vs f32 reference"

    print("KERNEL_OK")
</pallas_src>

<mosaic_0001>
module attributes {stable_mosaic.version = 11 : i64} {
  func.func @qnetwork_kernel(%arg0: i32, %arg1: memref<4x2048xf32, #tpu.memory_space<vmem>>, %arg2: memref<64x4xf32, #tpu.memory_space<vmem>>, %arg3: memref<64x1xf32, #tpu.memory_space<vmem>>, %arg4: memref<2x64xbf16, #tpu.memory_space<vmem>>, %arg5: memref<2x1xf32, #tpu.memory_space<vmem>>, %arg6: memref<2x2048xf32, #tpu.memory_space<vmem>>) attributes {dimension_semantics = [#tpu.dimension_semantics<parallel>], iteration_bounds = array<i64: 1>, scalar_prefetch = 0 : i64, scratch_operands = 0 : i64, tpu.core_type = #tpu.core_type<tc>, window_params = [{transform_indices = @transform_0, window_bounds = array<i64: 4, 2048>}, {pipeline_mode = #tpu.pipeline_mode<synchronous>, transform_indices = @transform_1, window_bounds = array<i64: 64, 4>}, {pipeline_mode = #tpu.pipeline_mode<synchronous>, transform_indices = @transform_2, window_bounds = array<i64: 64, 1>}, {pipeline_mode = #tpu.pipeline_mode<synchronous>, transform_indices = @transform_3, window_bounds = array<i64: 2, 64>}, {pipeline_mode = #tpu.pipeline_mode<synchronous>, transform_indices = @transform_4, window_bounds = array<i64: 2, 1>}, {transform_indices = @transform_5, window_bounds = array<i64: 2, 2048>}]} {
    %c0 = arith.constant 0 : index
    %c0_0 = arith.constant 0 : index
    %0 = vector.load %arg2[%c0, %c0_0] : memref<64x4xf32, #tpu.memory_space<vmem>>, vector<64x4xf32>
    %c0_1 = arith.constant 0 : index
    %c0_2 = arith.constant 0 : index
    %1 = vector.load %arg4[%c0_1, %c0_2] : memref<2x64xbf16, #tpu.memory_space<vmem>>, vector<2x64xbf16>
    %2 = vector.extract_strided_slice %0 {offsets = [0, 0], sizes = [64, 1], strides = [1, 1]} : vector<64x4xf32> to vector<64x1xf32>
    %3 = vector.shape_cast %2 : vector<64x1xf32> to vector<64x1xf32>
    %4 = vector.broadcast %3 : vector<64x1xf32> to vector<64x2048xf32>
    %5 = vector.extract_strided_slice %0 {offsets = [0, 1], sizes = [64, 1], strides = [1, 1]} : vector<64x4xf32> to vector<64x1xf32>
    %6 = vector.shape_cast %5 : vector<64x1xf32> to vector<64x1xf32>
    %7 = vector.broadcast %6 : vector<64x1xf32> to vector<64x2048xf32>
    %8 = vector.extract_strided_slice %0 {offsets = [0, 2], sizes = [64, 1], strides = [1, 1]} : vector<64x4xf32> to vector<64x1xf32>
    %9 = vector.shape_cast %8 : vector<64x1xf32> to vector<64x1xf32>
    %10 = vector.broadcast %9 : vector<64x1xf32> to vector<64x2048xf32>
    %11 = vector.extract_strided_slice %0 {offsets = [0, 3], sizes = [64, 1], strides = [1, 1]} : vector<64x4xf32> to vector<64x1xf32>
    %12 = vector.shape_cast %11 : vector<64x1xf32> to vector<64x1xf32>
    %13 = vector.broadcast %12 : vector<64x1xf32> to vector<64x2048xf32>
    %c0_3 = arith.constant 0 : index
    %c0_4 = arith.constant 0 : index
    %14 = vector.load %arg3[%c0_3, %c0_4] : memref<64x1xf32, #tpu.memory_space<vmem>>, vector<64x1xf32>
    %15 = vector.shape_cast %14 : vector<64x1xf32> to vector<64x1xf32>
    %16 = vector.broadcast %15 : vector<64x1xf32> to vector<64x2048xf32>
    %c0_5 = arith.constant 0 : index
    %c0_6 = arith.constant 0 : index
    %17 = vector.load %arg5[%c0_5, %c0_6] : memref<2x1xf32, #tpu.memory_space<vmem>>, vector<2x1xf32>
    %18 = vector.shape_cast %17 : vector<2x1xf32> to vector<2x1xf32>
    %19 = vector.broadcast %18 : vector<2x1xf32> to vector<2x2048xf32>
    %c0_i32 = arith.constant 0 : i32
    %c2048_i32 = arith.constant 2048 : i32
    %20 = arith.muli %c0_i32, %c2048_i32 : i32
    %21 = tpu.assume_multiple %20, 2048 : i32
    %c0_7 = arith.constant 0 : index
    %22 = arith.index_cast %21 : i32 to index
    %23 = vector.load %arg1[%c0_7, %22] : memref<4x2048xf32, #tpu.memory_space<vmem>>, vector<4x2048xf32>
    %24 = vector.extract_strided_slice %23 {offsets = [0, 0], sizes = [1, 2048], strides = [1, 1]} : vector<4x2048xf32> to vector<1x2048xf32>
    %25 = vector.broadcast %24 : vector<1x2048xf32> to vector<64x2048xf32>
    %26 = arith.mulf %4, %25 : vector<64x2048xf32>
    %27 = arith.addf %16, %26 : vector<64x2048xf32>
    %28 = vector.extract_strided_slice %23 {offsets = [1, 0], sizes = [1, 2048], strides = [1, 1]} : vector<4x2048xf32> to vector<1x2048xf32>
    %29 = vector.broadcast %28 : vector<1x2048xf32> to vector<64x2048xf32>
    %30 = arith.mulf %7, %29 : vector<64x2048xf32>
    %31 = arith.addf %27, %30 : vector<64x2048xf32>
    %32 = vector.extract_strided_slice %23 {offsets = [2, 0], sizes = [1, 2048], strides = [1, 1]} : vector<4x2048xf32> to vector<1x2048xf32>
    %33 = vector.broadcast %32 : vector<1x2048xf32> to vector<64x2048xf32>
    %34 = arith.mulf %10, %33 : vector<64x2048xf32>
    %35 = arith.addf %31, %34 : vector<64x2048xf32>
    %36 = vector.extract_strided_slice %23 {offsets = [3, 0], sizes = [1, 2048], strides = [1, 1]} : vector<4x2048xf32> to vector<1x2048xf32>
    %37 = vector.broadcast %36 : vector<1x2048xf32> to vector<64x2048xf32>
    %38 = arith.mulf %13, %37 : vector<64x2048xf32>
    %39 = arith.addf %35, %38 : vector<64x2048xf32>
    %cst = arith.constant 0.000000e+00 : f32
    %40 = vector.broadcast %cst : f32 to vector<64x2048xf32>
    %41 = arith.maximumf %39, %40 : vector<64x2048xf32>
    %42 = arith.truncf %41 : vector<64x2048xf32> to vector<64x2048xbf16>
    %cst_8 = arith.constant dense<0.000000e+00> : vector<2x2048xf32>
    %43 = tpu.matmul %1, %42, %cst_8 {dimension_numbers = #tpu.dot_dimension_numbers<[1], [0], [0], [1], [0, 0, 1, 1], [], []>} : vector<2x64xbf16>, vector<64x2048xbf16>, vector<2x2048xf32> -> vector<2x2048xf32>
    %44 = arith.addf %43, %19 : vector<2x2048xf32>
    %c0_9 = arith.constant 0 : index
    %45 = arith.index_cast %21 : i32 to index
    %46 = vector.load %arg6[%c0_9, %45] : memref<2x2048xf32, #tpu.memory_space<vmem>>, vector<2x2048xf32>
    tpu.vector_store %arg6[%c0_9, %45], %44 {strides = array<i32>} : memref<2x2048xf32, #tpu.memory_space<vmem>>, vector<2x2048xf32>,
    %c1_i32 = arith.constant 1 : i32
    return
  }
  func.func @transform_0(%arg0: i32) -> (i32, i32) {
    %c0_i32 = arith.constant 0 : i32
    %c0_i32_0 = arith.constant 0 : i32
    return %c0_i32, %arg0 : i32, i32
  }
  func.func @transform_1(%arg0: i32) -> (i32, i32) {
    %c0_i32 = arith.constant 0 : i32
    %c0_i32_0 = arith.constant 0 : i32
    %c0_i32_1 = arith.constant 0 : i32
    return %c0_i32, %c0_i32_0 : i32, i32
  }
  func.func @transform_2(%arg0: i32) -> (i32, i32) {
    %c0_i32 = arith.constant 0 : i32
    %c0_i32_0 = arith.constant 0 : i32
    %c0_i32_1 = arith.constant 0 : i32
    return %c0_i32, %c0_i32_0 : i32, i32
  }
  func.func @transform_3(%arg0: i32) -> (i32, i32) {
    %c0_i32 = arith.constant 0 : i32
    %c0_i32_0 = arith.constant 0 : i32
    %c0_i32_1 = arith.constant 0 : i32
    return %c0_i32, %c0_i32_0 : i32, i32
  }
  func.func @transform_4(%arg0: i32) -> (i32, i32) {
    %c0_i32 = arith.constant 0 : i32
    %c0_i32_0 = arith.constant 0 : i32
    %c0_i32_1 = arith.constant 0 : i32
    return %c0_i32, %c0_i32_0 : i32, i32
  }
  func.func @transform_5(%arg0: i32) -> (i32, i32) {
    %c0_i32 = arith.constant 0 : i32
    %c0_i32_0 = arith.constant 0 : i32
    return %c0_i32, %arg0 : i32, i32
  }
}

</mosaic_0001>

<bundles_post_ra>
// kernel: tpu_custom_call.1
= control target key start
LH: loop header
LB: loop body
LE: loop exit
PB: predicated region body
PF: predicated region fallthrough
CT: control target
= control target key end

     0   :  { %v2528_v2 = vmov 3   ;;  %v2529_v3 = vmov 1   ;;  %v4684_v5 = vmov 0   ;;  %s4678_s0 = inlined_call_operand.vmem [shape: f32[4,2048], index: 0, kind: input, shape index: {}]   ;;  %s4679_s1 = inlined_call_operand.vmem [shape: f32[64,4], index: 1, kind: input, shape index: {}]   ;;  %s4680_s2 = inlined_call_operand.vmem [shape: f32[64,1], index: 2, kind: input, shape index: {}]   ;;  %s4681_s3 = inlined_call_operand.vmem [shape: bf16[2,64], index: 3, kind: input, shape index: {}]   ;;  %s4682_s4 = inlined_call_operand.vmem [shape: f32[2,1], index: 4, kind: input, shape index: {}]   ;;  %s4683_s5 = inlined_call_operand.hbm [shape: f32[2,2048], index: 5, kind: output, shape index: {}]  }
   0x1   :  { %v24_v0 = vld [vmem:[%s4679_s1 + $0x10] sm:$0xff]  ;;  %v22_v1 = vld [vmem:[%s4679_s1] sm:$0xff]  ;;  %2489 = vset.pattern.permute.xlu0 %v2528_v2  ;;  %2481 = vset.pattern.permute.xlu1 %v2529_v3  ;;  %v23_v4 = vld [vmem:[%s4679_s1 + $0x8] sm:$0xff] }
   0x2   :  { %144 = vperm.xlu0 %2489, %v24_v0   ;;  %72 = vperm.xlu1 %2481, %v22_v1   ;;  %v25_v6 = vld [vmem:[%s4679_s1 + $0x18] sm:$0xff] }
   0x3   :  { %2065 = vmatprep.mubr.bf16.mxu0 %v4684_v5  ;;  %2106 = vmatprep.mubr.bf16.mxu1 %v4684_v5 }
   0x6   :  { %2490 = vset.pattern.permute.xlu0 %v2529_v3  ;;  %76 = vperm.xlu1 %2481, %v23_v4  }
   0x7   :  { %10 = vsyncpa [#allocation3], 0  ;;  %84 = vperm.xlu0 %2490, %v25_v6   ;;  %v2584_v7 = vld [vmem:[%s4679_s1 + $0x38] sm:$0xff]  ;;  %v168_v8 = vld [vmem:[%s4680_s2 + $0x8] sm:$0xff]  ;;  %v2531_v9 = vmov 2   ;;  %v237_v20 = vlaneseq  ;;  %vm2029_vm0 = vcmask 523264  }
   0x8   :  { %v167_v10 = vld [vmem:[%s4680_s2] sm:$0xff]  ;;  %v169_v11 = vld [vmem:[%s4680_s2 + $0x10] sm:$0xff]  ;;  %v27_v12 = vld [vmem:[%s4679_s1 + $0x28] sm:$0xff] }
   0x9   :  { %v170_v13 = vld [vmem:[%s4680_s2 + $0x18] sm:$0xff]  ;;  %v172_v14 = vld [vmem:[%s4680_s2 + $0x28] sm:$0xff]  ;;  %v26_v15 = vld [vmem:[%s4679_s1 + $0x20] sm:$0xff]  ;;  %v2634_v21 = vshrl.u32 %v237_v20, 7 }
   0xa   :  { %2482 = vset.pattern.permute.xlu1 %v4684_v5  ;;  %v173_v16 = vld [vmem:[%s4680_s2 + $0x30] sm:$0xff]  ;;  %v171_v17 = vld [vmem:[%s4680_s2 + $0x20] sm:$0xff]  ;;  %v174_v19 = vld [vmem:[%s4680_s2 + $0x38] sm:$0xff] }
   0xb   :  { %100 = vperm.xlu0 %2490, %v2584_v7   ;;  %182 = vperm.xlu1 %2482, %v168_v8   ;;  %v28_v18 = vld [vmem:[%s4679_s1 + $0x30] sm:$0xff]  ;;  %4868 = vst [vmem:[#allocation5_spill] sm:$0xff] %v2634_v21  ;;  %v2638_v22 = vsub.s32 5, %v2634_v21  ;;  %v2643_v23 = vld [vmem:[%s4678_s0] sm:$0xff]  ;;  %v2648_v24 = vld [vmem:[%s4678_s0 + $0x8] sm:$0xff]  ;;  %v2652_v25 = vsub.s32 1, %v2634_v21 }
   0xc   :  { %v2659_v28 = vsub.s32 4, %v2634_v21  ;;  %v2662_v29 = vsub.s32 0, %v2634_v21  ;;  %v2665_v30 = vsub.s32 6, %v2634_v21  ;;  %v2670_v31 = vld [vmem:[%s4678_s0 + $0x10] sm:$0xff]  ;;  %v2673_v32 = vsub.s32 2, %v2634_v21  ;;  %v2688_v37 = vld [vmem:[%s4678_s0 + $0x18] sm:$0xff] }
   0xd   :  { %4869 = vst [vmem:[#allocation6_spill] sm:$0xff] %v2638_v22  ;;  %4870 = vst [vmem:[#allocation7_spill] sm:$0xff] %v2652_v25  ;;  %v644_v26 = vrot.slane %v2643_v23, %v2638_v22  ;;  %v652_v27 = vrot.slane %v2648_v24, %v2638_v22  ;;  %v640_v35 = vrot.slane %v2643_v23, %v2652_v25  ;;  %v2693_v39 = vsub.s32 7, %v2634_v21 }
   0xe   :  { %4871 = vst [vmem:[#allocation8_spill] sm:$0xff] %v2659_v28  ;;  %4872 = vst [vmem:[#allocation9_spill] sm:$0xff] %v2662_v29  ;;  %v648_v36 = vrot.slane %v2648_v24, %v2652_v25  ;;  %v244_v38 = vrot.slane %v2643_v23, %v2659_v28  ;;  %v252_v40 = vrot.slane %v2648_v24, %v2659_v28  ;;  %v2716_v50 = vsub.s32 3, %v2634_v21 }
   0xf   :  { %2495 = vset.pattern.permute.xlu0 %v4684_v5  ;;  %48 = vperm.xlu1 %2482, %v25_v6   ;;  %4873 = vst [vmem:[#allocation10_spill] sm:$0xff] %v2665_v30  ;;  %4874 = vst [vmem:[#allocation11_spill] sm:$0xff] %v2673_v32  ;;  %v2676_v33 = vrot.slane %v644_v26, %v2652_v25  ;;  %v2679_v34 = vrot.slane %v652_v27, %v2652_v25 }
  0x10   :  { %33 = vperm.xlu0 %2495, %v22_v1   ;;  %4875 = vst [vmem:[#allocation12_spill] sm:$0xff] %v2693_v39  ;;  %v660_v41 = vrot.slane %v2670_v31, %v2638_v22  ;;  %v1044_v42 = vrot.slane %v2643_v23, %v2665_v30  ;;  %v1052_v43 = vrot.slane %v2648_v24, %v2665_v30  ;;  %4876 = vst [vmem:[#allocation13_spill] sm:$0xff] %v2716_v50 }
  0x11   :  { %v240_v44 = vrot.slane %v2643_v23, %v2662_v29  ;;  %v248_v45 = vrot.slane %v2648_v24, %v2662_v29  ;;  %v1040_v46 = vrot.slane %v2643_v23, %v2673_v32  ;;  %v1048_v47 = vrot.slane %v2648_v24, %v2673_v32 }
  0x12   :  { %v260_v48 = vrot.slane %v2670_v31, %v2659_v28  ;;  %v668_v49 = vrot.slane %v2688_v37, %v2638_v22  ;;  %v2719_v51 = vrot.slane %v640_v35, %v2652_v25  ;;  %v2722_v52 = vrot.slane %v648_v36, %v2652_v25 }
  0x13   :  { %2483 = vset.pattern.permute.xlu1 %v2531_v9  ;;  %v656_v53 = vrot.slane %v2670_v31, %v2652_v25  ;;  %v2727_v54 = vrot.slane %v244_v38, %v2662_v29  ;;  %v1444_v55 = vrot.slane %v2643_v23, %v2693_v39  ;;  %v2732_v56 = vrot.slane %v252_v40, %v2662_v29 }
  0x14   :  { %38 = vperm.xlu0 %2495, %v23_v4   ;;  %108 = vperm.xlu1 %2483, %v23_v4   ;;  %4877 = vst [vmem:[#allocation14_spill] sm:$0xff] %v2722_v52  ;;  %v2735_v57 = vrot.slane %v660_v41, %v2652_v25  ;;  %v2738_v58 = vrot.slane %v1044_v42, %v2673_v32 }
  0x15   :  { %4878 = vst [vmem:[#allocation15_spill] sm:$0xff] %v2732_v56  ;;  %v2741_v59 = vrot.slane %v1052_v43, %v2673_v32  ;;  %v2744_v60 = vrot.slane %v240_v44, %v2662_v29  ;;  %v2747_v61 = vrot.slane %v248_v45, %v2662_v29  ;;  %v2750_v62 = vrot.slane %v1040_v46, %v2673_v32 }
  0x16   :  { %4879 = vst [vmem:[#allocation16_spill] sm:$0xff] %v2735_v57  ;;  %4880 = vst [vmem:[#allocation17_spill] sm:$0xff] %v2738_v58  ;;  %v2753_v63 = vrot.slane %v1048_v47, %v2673_v32  ;;  %v1448_v8 = vrot.slane %v2648_v24, %v2716_v50  ;;  %v1064_v20 = vrot.slane %v2688_v37, %v2673_v32 }
  0x17   :  { %4881 = vst [vmem:[#allocation18_spill] sm:$0xff] %v2741_v59  ;;  %4882 = vst [vmem:[#allocation19_spill] sm:$0xff] %v2744_v60  ;;  %v1464_v27 = vrot.slane %v2688_v37, %v2716_v50 }
  0x18   :  { %177 = vperm.xlu0 %2495, %v167_v10   ;;  %2484 = vset.pattern.permute.xlu1 %v2529_v3  ;;  %4883 = vst [vmem:[#allocation20_spill] sm:$0xff] %v2747_v61  ;;  %4884 = vst [vmem:[#allocation21_spill] sm:$0xff] %v2750_v62  ;;  %v256_v10 = vrot.slane %v2670_v31, %v2662_v29  ;;  %v2815_v36 = vrot.slane %v1448_v8, %v2716_v50 }
  0x19   :  { %80 = vperm.xlu1 %2484, %v24_v0   ;;  %4885 = vst [vmem:[#allocation22_spill] sm:$0xff] %v2753_v63 }
  0x1a   :  { %4893 = vst [vmem:[#allocation30_spill] sm:$0xff] %v2815_v36  ;;  %v2821_v40 = vrot.slane %v256_v10, %v2662_v29 }
  0x1c   :  { %43 = vperm.xlu0 %2495, %v24_v0   ;;  %4895 = vst [vmem:[#allocation32_spill] sm:$0xff] %v2821_v40 }
  0x1d   :  { %2485 = vset.pattern.permute.xlu1 %v2528_v2 }
  0x1e   :  { %136 = vperm.xlu1 %2485, %v22_v1  }
  0x20   :  { %187 = vperm.xlu0 %2495, %v169_v11   ;;  %v1460_v11 = vrot.slane %v2670_v31, %v2693_v39 }
  0x22   :  { %140 = vperm.xlu1 %2485, %v23_v4   ;;  %v1060_v4 = vrot.slane %v2670_v31, %v2665_v30  ;;  %v2824_v41 = vrot.slane %v1460_v11, %v2716_v50 }
  0x24   :  { %58 = vperm.xlu0 %2495, %v27_v12   ;;  %v2806_v26 = vrot.slane %v1060_v4, %v2673_v32  ;;  %4896 = vst [vmem:[#allocation33_spill] sm:$0xff] %v2824_v41 }
  0x26   :  { %2486 = vset.pattern.permute.xlu1 %v4684_v5  ;;  %4891 = vst [vmem:[#allocation28_spill] sm:$0xff] %v2806_v26 }
  0x27   :  { %192 = vperm.xlu1 %2486, %v170_v13   ;;  %v1468_v13 = vrot.slane %v2688_v37, %v2693_v39 }
  0x28   :  { %202 = vperm.xlu0 %2495, %v172_v14   ;;  %v664_v14 = vrot.slane %v2688_v37, %v2652_v25 }
  0x2a   :  { %v2833_v43 = vrot.slane %v664_v14, %v2652_v25 }
  0x2b   :  { %53 = vperm.xlu1 %2486, %v26_v15  }
  0x2c   :  { %207 = vperm.xlu0 %2495, %v173_v16   ;;  %4899 = vst [vmem:[#allocation36_spill] sm:$0xff] %v2833_v43 }
  0x2f   :  { %2487 = vset.pattern.permute.xlu1 %v2531_v9 }
  0x30   :  { %2497 = vset.pattern.permute.xlu0 %v2531_v9  ;;  %112 = vperm.xlu1 %2487, %v24_v0   ;;  %v2756_v0 = vrot.slane %v260_v48, %v2662_v29  ;;  %v2847_v48 = vrot.slane %v1064_v20, %v2673_v32 }
  0x31   :  { %104 = vperm.xlu0 %2497, %v22_v1   ;;  %v2759_v1 = vrot.slane %v668_v49, %v2652_v25 }
  0x32   :  { %4886 = vst [vmem:[#allocation23_spill] sm:$0xff] %v2756_v0  ;;  %4904 = vst [vmem:[#allocation41_spill] sm:$0xff] %v2847_v48 }
  0x33   :  { %4887 = vst [vmem:[#allocation24_spill] sm:$0xff] %v2759_v1 }
  0x34   :  { %2488 = vset.pattern.permute.xlu1 %v2529_v3 }
  0x35   :  { %116 = vperm.xlu0 %2497, %v25_v6   ;;  %88 = vperm.xlu1 %2488, %v26_v15  }
  0x39   :  { %92 = vperm.xlu1 %2488, %v27_v12   ;;  %120 = vperm.xlu0 %2497, %v26_v15  }
  0x3d   :  { %2491 = vset.pattern.permute.xlu1 %v2528_v2  ;;  %132 = vperm.xlu0 %2497, %v2584_v7  }
  0x3e   :  { %148 = vperm.xlu1 %2491, %v25_v6   ;;  %v2768_v6 = vrot.slane %v656_v53, %v2652_v25 }
  0x40   :  { %4888 = vst [vmem:[#allocation25_spill] sm:$0xff] %v2768_v6 }
  0x41   :  { %2501 = vset.pattern.permute.xlu0 %v4684_v5 }
  0x42   :  { %2492 = vset.pattern.permute.xlu1 %v4684_v5 }
  0x43   :  { %197 = vperm.xlu1 %2492, %v171_v17   ;;  %v1056_v17 = vrot.slane %v2670_v31, %v2673_v32 }
  0x45   :  { %v2838_v45 = vrot.slane %v1056_v17, %v2673_v32 }
  0x47   :  { %63 = vperm.xlu1 %2492, %v28_v18   ;;  %4901 = vst [vmem:[#allocation38_spill] sm:$0xff] %v2838_v45 }
  0x4b   :  { %68 = vperm.xlu1 %2492, %v2584_v7  }
  0x4f   :  { %2493 = vset.pattern.permute.xlu1 %v2531_v9 }
  0x50   :  { %124 = vperm.xlu1 %2493, %v27_v12  }
  0x54   :  { %2494 = vset.pattern.permute.xlu1 %v2529_v3  ;;  %v1440_v3 = vrot.slane %v2643_v23, %v2716_v50  ;;  %v225_v23 = vld [vmem:[%s4678_s0 + $0x20] sm:$0xff] }
  0x55   :  { %96 = vperm.xlu1 %2494, %v28_v18  }
  0x56   :  { %v2812_v35 = vrot.slane %v1440_v3, %v2716_v50 }
  0x58   :  { %4892 = vst [vmem:[#allocation29_spill] sm:$0xff] %v2812_v35 }
  0x59   :  { %2496 = vset.pattern.permute.xlu1 %v2528_v2 }
  0x5a   :  { %152 = vperm.xlu1 %2496, %v26_v15  }
  0x5e   :  { %156 = vperm.xlu1 %2496, %v27_v12   ;;  %v1068_v12 = vrot.slane %v2688_v37, %v2665_v30 }
  0x60   :  { %v2827_v42 = vrot.slane %v1068_v12, %v2673_v32 }
  0x62   :  { %2498 = vset.pattern.permute.xlu1 %v4684_v5  ;;  %4897 = vst [vmem:[#allocation34_spill] sm:$0xff] %v2827_v42 }
  0x63   :  { %212 = vperm.xlu1 %2498, %v174_v19   ;;  %v264_v19 = vrot.slane %v2688_v37, %v2662_v29 }
  0x65   :  { %v2844_v47 = vrot.slane %v264_v19, %v2662_v29 }
  0x67   :  { %2499 = vset.pattern.permute.xlu1 %v2531_v9  ;;  %v268_v9 = vrot.slane %v2688_v37, %v2659_v28  ;;  %v2830_v37 = vrot.slane %v1468_v13, %v2716_v50  ;;  %4903 = vst [vmem:[#allocation40_spill] sm:$0xff] %v2844_v47 }
  0x68   :  { %128 = vperm.xlu1 %2499, %v28_v18  }
  0x69   :  { %v2818_v38 = vrot.slane %v268_v9, %v2662_v29  ;;  %4898 = vst [vmem:[#allocation35_spill] sm:$0xff] %v2830_v37 }
  0x6b   :  { %4894 = vst [vmem:[#allocation31_spill] sm:$0xff] %v2818_v38 }
  0x6c   :  { %2500 = vset.pattern.permute.xlu1 %v2528_v2  ;;  %v1452_v2 = vrot.slane %v2648_v24, %v2693_v39 }
  0x6d   :  { %160 = vperm.xlu1 %2500, %v28_v18   ;;  %v1456_v18 = vrot.slane %v2670_v31, %v2716_v50  ;;  %v276_v31 = vrot.slane %v225_v23, %v2659_v28 }
  0x6e   :  { %v2803_v24 = vrot.slane %v1452_v2, %v2716_v50  ;;  %v2860_v2 = vrot.slane %v1464_v27, %v2716_v50 }
  0x6f   :  { %v2841_v46 = vrot.slane %v1456_v18, %v2716_v50  ;;  %v2863_v3 = vrot.slane %v276_v31, %v2662_v29 }
  0x70   :  { %4906 = vst [vmem:[#allocation43_spill] sm:$0xff] %v2860_v2 }
  0x71   :  { %164 = vperm.xlu1 %2500, %v2584_v7   ;;  %v2771_v7 = vrot.slane %v1444_v55, %v2716_v50  ;;  %4902 = vst [vmem:[#allocation39_spill] sm:$0xff] %v2841_v46  ;;  %4907 = vst [vmem:[#allocation44_spill] sm:$0xff] %v2863_v3  ;;  %v676_v50 = vrot.slane %v225_v23, %v2638_v22 }
  0x81   :  { %v2787_v15 = vpop.permute.xlu1 %72  ;;  %v2789_v16 = vpop.permute.xlu0 %144 }
  0x82   :  { %4889 = vst [vmem:[#allocation26_spill] sm:$0xff] %v2787_v15  ;;  %4890 = vst [vmem:[#allocation27_spill] sm:$0xff] %v2789_v16  ;;  %v2853_v53 = vmul.f32 %v2676_v33, %v2787_v15  ;;  %v2857_v55 = vmul.f32 %v2679_v34, %v2787_v15  ;;  %v2867_v4 = vmul.f32 %v2719_v51, %v2787_v15 }
  0x83   :  { %v2871_v8 = vmul.f32 %v2722_v52, %v2787_v15  ;;  %v2875_v9 = vmul.f32 %v2771_v7, %v2789_v16  ;;  %v2879_v10 = vmul.f32 %v2803_v24, %v2789_v16  ;;  %v2883_v11 = vmul.f32 %v2812_v35, %v2789_v16 }
  0x84   :  { %v2887_v12 = vmul.f32 %v2815_v36, %v2789_v16  ;;  %v2891_v13 = vmul.f32 %v2735_v57, %v2787_v15  ;;  %v2895_v14 = vmul.f32 %v2759_v1, %v2787_v15  ;;  %v2899_v17 = vmul.f32 %v2768_v6, %v2787_v15 }
  0x85   :  { %v2835_v44 = vpop.permute.xlu1 %76  ;;  %4908 = vst [vmem:[#allocation45_spill] sm:$0xff] %v2875_v9  ;;  %4909 = vst [vmem:[#allocation46_spill] sm:$0xff] %v2879_v10  ;;  %v2903_v18 = vmul.f32 %v2833_v43, %v2787_v15  ;;  %v2907_v19 = vmul.f32 %v2824_v41, %v2789_v16  ;;  %v2911_v20 = vmul.f32 %v2830_v37, %v2789_v16 }
  0x86   :  { %4900 = vst [vmem:[#allocation37_spill] sm:$0xff] %v2835_v44  ;;  %v2849_v49 = vpop.permute.xlu0 %84  ;;  %4910 = vst [vmem:[#allocation47_spill] sm:$0xff] %v2883_v11  ;;  %v2919_v5 = vmul.f32 %v2676_v33, %v2835_v44  ;;  %v2923_v21 = vmul.f32 %v2841_v46, %v2789_v16  ;;  %v2927_v29 = vmul.f32 %v2860_v2, %v2789_v16 }
  0x87   :  { %4905 = vst [vmem:[#allocation42_spill] sm:$0xff] %v2849_v49  ;;  %4911 = vst [vmem:[#allocation48_spill] sm:$0xff] %v2887_v12  ;;  %v800_v28 = vmul.f32 %v2679_v34, %v2835_v44  ;;  %v797_v32 = vmul.f32 %v2719_v51, %v2835_v44  ;;  %v2936_v39 = vmul.f32 %v2722_v52, %v2835_v44 }
  0x88   :  { %4912 = vst [vmem:[#allocation49_spill] sm:$0xff] %v2899_v17  ;;  %4913 = vst [vmem:[#allocation50_spill] sm:$0xff] %v2903_v18  ;;  %v2940_v30 = vmul.f32 %v2676_v33, %v2849_v49  ;;  %v2944_v16 = vmul.f32 %v2679_v34, %v2849_v49  ;;  %v2948_v23 = vmul.f32 %v2719_v51, %v2849_v49 }
  0x89   :  { %4914 = vst [vmem:[#allocation51_spill] sm:$0xff] %v2907_v19  ;;  %4915 = vst [vmem:[#allocation52_spill] sm:$0xff] %v2911_v20  ;;  %v2952_v22 = vmul.f32 %v2722_v52, %v2849_v49  ;;  %v2963_v20 = vmul.f32 %v2759_v1, %v2835_v44  ;;  %v2967_v19 = vmul.f32 %v2768_v6, %v2835_v44 }
  0x8a   :  { %v2913_v27 = vpop.permute.xlu1 %182  ;;  %v2915_v31 = vpop.permute.xlu0 %100  ;;  %4918 = vst [vmem:[#allocation55_spill] sm:$0xff] %v2923_v21  ;;  %4919 = vst [vmem:[#allocation56_spill] sm:$0xff] %v2927_v29  ;;  %v2955_v29 = vrot.slane %v676_v50, %v2652_v25  ;;  %v2959_v21 = vmul.f32 %v2735_v57, %v2835_v44  ;;  %v2971_v18 = vmul.f32 %v2833_v43, %v2835_v44 }
  0x8b   :  { %4916 = vst [vmem:[#allocation53_spill] sm:$0xff] %v2913_v27  ;;  %4917 = vst [vmem:[#allocation54_spill] sm:$0xff] %v2915_v31  ;;  %v2977_v50 = vmul.f32 %v2735_v57, %v2849_v49  ;;  %v2981_v25 = vmul.f32 %v2759_v1, %v2849_v49  ;;  %v2985_v11 = vmul.f32 %v2768_v6, %v2849_v49 }
  0x8c   :  { %4920 = vst [vmem:[#allocation57_spill] sm:$0xff] %v2952_v22  ;;  %4921 = vst [vmem:[#allocation58_spill] sm:$0xff] %v2955_v29  ;;  %v3023_v6 = vmul.f32 %v2955_v29, %v2787_v15  ;;  %v3085_v37 = vmul.f32 %v2955_v29, %v2835_v44 }
  0x8d   :  { %4922 = vst [vmem:[#allocation59_spill] sm:$0xff] %v2963_v20  ;;  %4923 = vst [vmem:[#allocation60_spill] sm:$0xff] %v2967_v19  ;;  %v2989_v19 = vmul.f32 %v2833_v43, %v2849_v49 }
  0x8e   :  { %4924 = vst [vmem:[#allocation61_spill] sm:$0xff] %v2971_v18  ;;  %v2973_v12 = vpop.permute.xlu1 %48  ;;  %4926 = vst [vmem:[#allocation63_spill] sm:$0xff] %v2977_v50  ;;  %v2995_v18 = vmul.f32 %v2676_v33, %v2915_v31  ;;  %v2999_v50 = vmul.f32 %v2679_v34, %v2915_v31 }
  0x8f   :  { %4925 = vst [vmem:[#allocation62_spill] sm:$0xff] %v2973_v12  ;;  %4927 = vst [vmem:[#allocation64_spill] sm:$0xff] %v2981_v25  ;;  %v2991_v2 = vpop.permute.xlu0 %33  ;;  %v3003_v25 = vmul.f32 %v2719_v51, %v2915_v31  ;;  %v3011_v49 = vmul.f32 %v2727_v54, %v2973_v12  ;;  %v3019_v43 = vmul.f32 %v2744_v60, %v2973_v12 }
  0x90   :  { %4928 = vst [vmem:[#allocation65_spill] sm:$0xff] %v2985_v11  ;;  %4929 = vst [vmem:[#allocation66_spill] sm:$0xff] %v2989_v19  ;;  %v3007_v11 = vmul.f32 %v2722_v52, %v2915_v31  ;;  %v3015_v19 = vmul.f32 %v2732_v56, %v2973_v12  ;;  %v382_v31 = vmul.f32 %v2727_v54, %v2991_v2 }
  0x91   :  { %4930 = vst [vmem:[#allocation67_spill] sm:$0xff] %v2991_v2  ;;  %4931 = vst [vmem:[#allocation68_spill] sm:$0xff] %v2995_v18  ;;  %v383_v18 = vmul.f32 %v2747_v61, %v2991_v2  ;;  %v386_v15 = vmul.f32 %v2756_v0, %v2991_v2  ;;  %v3043_v1 = vmul.f32 %v2821_v40, %v2991_v2 }
  0x92   :  { %4932 = vst [vmem:[#allocation69_spill] sm:$0xff] %v2999_v50  ;;  %4933 = vst [vmem:[#allocation70_spill] sm:$0xff] %v3003_v25  ;;  %v381_v25 = vmul.f32 %v2744_v60, %v2991_v2  ;;  %v3033_v50 = vmul.f32 %v2747_v61, %v2973_v12  ;;  %v3051_v10 = vmul.f32 %v2844_v47, %v2991_v2 }
  0x93   :  { %4934 = vst [vmem:[#allocation71_spill] sm:$0xff] %v3007_v11  ;;  %4935 = vst [vmem:[#allocation72_spill] sm:$0xff] %v3023_v6  ;;  %v384_v11 = vmul.f32 %v2732_v56, %v2991_v2  ;;  %v388_v6 = vmul.f32 %v2818_v38, %v2991_v2  ;;  %v3045_v57 = vpop.permute.xlu0 %38  ;;  %v3047_v48 = vpop.permute.xlu1 %108  ;;  %v3055_v9 = vmul.f32 %v2756_v0, %v2973_v12 }
  0x94   :  { %4936 = vst [vmem:[#allocation73_spill] sm:$0xff] %v3043_v1  ;;  %4937 = vst [vmem:[#allocation74_spill] sm:$0xff] %v3045_v57  ;;  %v3059_v17 = vmul.f32 %v2818_v38, %v2973_v12  ;;  %v3063_v46 = vmul.f32 %v2821_v40, %v2973_v12  ;;  %v398_v45 = vmul.f32 %v2727_v54, %v3045_v57 }
  0x95   :  { %4938 = vst [vmem:[#allocation75_spill] sm:$0xff] %v3047_v48  ;;  %4939 = vst [vmem:[#allocation76_spill] sm:$0xff] %v3051_v10  ;;  %v400_v1 = vmul.f32 %v2732_v56, %v3045_v57  ;;  %v3071_v10 = vmul.f32 %v2844_v47, %v2973_v12  ;;  %v399_v40 = vmul.f32 %v2747_v61, %v3045_v57 }
  0x96   :  { %4940 = vst [vmem:[#allocation77_spill] sm:$0xff] %v3055_v9  ;;  %4941 = vst [vmem:[#allocation78_spill] sm:$0xff] %v3059_v17  ;;  %v3075_v9 = vmul.f32 %v2863_v3, %v2991_v2  ;;  %v1198_v17 = vmul.f32 %v2738_v58, %v3047_v48  ;;  %v526_v12 = vadd.f32 %v398_v45, %v2913_v27 }
  0x97   :  { %4942 = vst [vmem:[#allocation79_spill] sm:$0xff] %v3063_v46  ;;  %4943 = vst [vmem:[#allocation80_spill] sm:$0xff] %v3071_v10  ;;  %v397_v46 = vmul.f32 %v2744_v60, %v3045_v57  ;;  %v528_v10 = vadd.f32 %v400_v1, %v2913_v27  ;;  %v1200_v2 = vmul.f32 %v2741_v59, %v3047_v48  ;;  %v3093_v3 = vpop.permute.xlu0 %177 }
  0x98   :  { %4944 = vst [vmem:[#allocation81_spill] sm:$0xff] %v3075_v9  ;;  %4945 = vst [vmem:[#allocation82_spill] sm:$0xff] %v3085_v37  ;;  %v1197_v9 = vmul.f32 %v2750_v62, %v3047_v48  ;;  %v527_v47 = vadd.f32 %v399_v40, %v2913_v27  ;;  %v1199_v29 = vmul.f32 %v2753_v63, %v3047_v48  ;;  %v3101_v44 = vpop.permute.xlu1 %80 }
  0x99   :  { %4946 = vst [vmem:[#allocation83_spill] sm:$0xff] %v3093_v3  ;;  %v525_v58 = vadd.f32 %v397_v46, %v2913_v27  ;;  %v402_v45 = vmul.f32 %v2756_v0, %v3045_v57  ;;  %4947 = vst [vmem:[#allocation84_spill] sm:$0xff] %v3101_v44  ;;  %v510_v1 = vadd.f32 %v382_v31, %v3093_v3 }
  0x9a   :  { %v926_v37 = vadd.f32 %v2919_v5, %v526_v12  ;;  %v512_v62 = vadd.f32 %v384_v11, %v3093_v3  ;;  %v928_v59 = vadd.f32 %v800_v28, %v528_v10  ;;  %v509_v22 = vadd.f32 %v381_v25, %v3093_v3 }
  0x9b   :  { %v925_v46 = vadd.f32 %v797_v32, %v525_v58  ;;  %v511_v40 = vadd.f32 %v383_v18, %v3093_v3  ;;  %v927_v20 = vadd.f32 %v2936_v39, %v527_v47  ;;  %v3110_v63 = vadd.f32 %v2853_v53, %v510_v1  ;;  %v3122_v25 = vpop.permute.xlu0 %43 }
  0x9c   :  { %v3114_v0 = vmul.f32 %v2806_v26, %v3047_v48  ;;  %v404_v5 = vmul.f32 %v2818_v38, %v3045_v57  ;;  %v3120_v28 = vmul.f32 %v2827_v42, %v3047_v48  ;;  %4948 = vst [vmem:[#allocation85_spill] sm:$0xff] %v3122_v25  ;;  %v1326_v32 = vadd.f32 %v1198_v17, %v926_v37 }
  0x9d   :  { %v3125_v58 = vadd.f32 %v2857_v55, %v512_v62  ;;  %v1328_v39 = vadd.f32 %v1200_v2, %v928_v59  ;;  %v3128_v47 = vadd.f32 %v2867_v4, %v509_v22  ;;  %v1325_v53 = vadd.f32 %v1197_v9, %v925_v46  ;;  %v3135_v18 = vpop.permute.xlu1 %136 }
  0x9e   :  { %v3131_v10 = vadd.f32 %v2871_v8, %v511_v40  ;;  %v1327_v11 = vadd.f32 %v1199_v29, %v927_v20  ;;  %v414_v12 = vmul.f32 %v2727_v54, %v3122_v25  ;;  %4949 = vst [vmem:[#allocation86_spill] sm:$0xff] %v3135_v18  ;;  %v814_v37 = vmul.f32 %v2676_v33, %v3101_v44 }
  0x9f   :  { %v416_v62 = vmul.f32 %v2732_v56, %v3122_v25  ;;  %v413_v22 = vmul.f32 %v2744_v60, %v3122_v25  ;;  %v415_v59 = vmul.f32 %v2747_v61, %v3122_v25  ;;  %v3147_v29 = vmul.f32 %v2771_v7, %v3135_v18  ;;  %v3155_v8 = vpop.permute.xlu0 %187 }
  0xa0   :  { %v816_v55 = vmul.f32 %v2679_v34, %v3101_v44  ;;  %v813_v2 = vmul.f32 %v2719_v51, %v3101_v44  ;;  %v815_v4 = vmul.f32 %v2722_v52, %v3101_v44  ;;  %4950 = vst [vmem:[#allocation87_spill] sm:$0xff] %v3155_v8  ;;  %v3159_v9 = vmul.f32 %v2803_v24, %v3135_v18 }
  0xa1   :  { %v514_v17 = vadd.f32 %v386_v15, %v3093_v3  ;;  %v530_v20 = vadd.f32 %v402_v45, %v2913_v27  ;;  %v516_v31 = vadd.f32 %v388_v6, %v3093_v3  ;;  %v3166_v1 = vmul.f32 %v2812_v35, %v3135_v18  ;;  %v3177_v44 = vpop.permute.xlu1 %140 }
  0xa2   :  { %v3170_v46 = vmul.f32 %v2815_v36, %v3135_v18  ;;  %v542_v40 = vadd.f32 %v414_v12, %v3155_v8  ;;  %v3175_v38 = vmul.f32 %v2824_v41, %v3135_v18  ;;  %4952 = vst [vmem:[#allocation89_spill] sm:$0xff] %v3177_v44  ;;  %v544_v15 = vadd.f32 %v416_v62, %v3155_v8 }
  0xa3   :  { %v541_v6 = vadd.f32 %v413_v22, %v3155_v8  ;;  %v543_v45 = vadd.f32 %v415_v59, %v3155_v8  ;;  %v3183_v25 = vadd.f32 %v2891_v13, %v514_v17  ;;  %v1598_v42 = vmul.f32 %v2771_v7, %v3177_v44  ;;  %v3193_v62 = vpop.permute.xlu0 %58 }
  0xa4   :  { %4951 = vst [vmem:[#allocation88_spill] sm:$0xff] %v3175_v38  ;;  %v1600_v12 = vmul.f32 %v2803_v24, %v3177_v44  ;;  %v1597_v38 = vmul.f32 %v2812_v35, %v3177_v44  ;;  %v1599_v26 = vmul.f32 %v2815_v36, %v3177_v44  ;;  %4954 = vst [vmem:[#allocation91_spill] sm:$0xff] %v3193_v62 }
  0xa5   :  { %4953 = vst [vmem:[#allocation90_spill] sm:$0xff] %v3183_v25  ;;  %v3195_v22 = vadd.f32 %v814_v37, %v542_v40  ;;  %v930_v59 = vadd.f32 %v2959_v21, %v530_v20  ;;  %v532_v13 = vadd.f32 %v404_v5, %v2913_v27  ;;  %v3200_v17 = vadd.f32 %v2895_v14, %v516_v31 }
  0xa6   :  { %v3202_v8 = vadd.f32 %v1598_v42, %v1326_v32  ;;  %v3204_v25 = vadd.f32 %v1600_v12, %v1328_v39  ;;  %v3206_v52 = vadd.f32 %v1597_v38, %v1325_v53  ;;  %v3208_v35 = vadd.f32 %v1599_v26, %v1327_v11  ;;  %v3218_v42 = vpop.permute.xlu1 %192 }
  0xa7   :  { %4955 = vst [vmem:[#allocation92_spill] sm:$0xff] %v3200_v17  ;;  %v462_v36 = vmul.f32 %v2727_v54, %v3193_v62  ;;  %v464_v37 = vmul.f32 %v2732_v56, %v3193_v62  ;;  %v461_v21 = vmul.f32 %v2744_v60, %v3193_v62  ;;  %v463_v14 = vmul.f32 %v2747_v61, %v3193_v62  ;;  %v3221_v39 = vpop.permute.xlu0 %202 }
  0xa8   :  { %4956 = vst [vmem:[#allocation93_spill] sm:$0xff] %v3218_v42  ;;  %v944_v38 = vadd.f32 %v816_v55, %v544_v15  ;;  %v941_v32 = vadd.f32 %v813_v2, %v541_v6  ;;  %v943_v26 = vadd.f32 %v815_v4, %v543_v45  ;;  %4957 = vst [vmem:[#allocation94_spill] sm:$0xff] %v3221_v39  ;;  %v4959_v45 = vld [vmem:[#allocation59_spill] sm:$0xff]  ;;  %v4965_v55 = vld [vmem:[#allocation73_spill] sm:$0xff] }
  0xa9   :  { %v558_v53 = vadd.f32 %v3011_v49, %v3218_v42  ;;  %v560_v11 = vadd.f32 %v3015_v19, %v3218_v42  ;;  %v557_v20 = vadd.f32 %v3019_v43, %v3218_v42  ;;  %v559_v31 = vadd.f32 %v3033_v50, %v3218_v42 }
  0xaa   :  { %v3235_v4 = vadd.f32 %v462_v36, %v3221_v39  ;;  %v3241_v19 = vadd.f32 %v464_v37, %v3221_v39  ;;  %v3244_v43 = vadd.f32 %v461_v21, %v3221_v39  ;;  %v3247_v50 = vadd.f32 %v463_v14, %v3221_v39  ;;  %v3249_v15 = vpop.permute.xlu1 %53  ;;  %v4961_v21 = vld [vmem:[#allocation57_spill] sm:$0xff]  ;;  %v4968_v39 = vld [vmem:[#allocation39_spill] sm:$0xff] }
  0xab   :  { %v3238_v49 = vadd.f32 %v2940_v30, %v558_v53  ;;  %4958 = vst [vmem:[#allocation95_spill] sm:$0xff] %v3249_v15  ;;  %v3252_v6 = vadd.f32 %v2944_v16, %v560_v11  ;;  %v3255_v36 = vadd.f32 %v2948_v23, %v557_v20  ;;  %v1602_v30 = vmul.f32 %v2824_v41, %v3177_v44  ;;  %v3260_v37 = vpop.permute.xlu0 %207  ;;  %v4962_v11 = vld [vmem:[#allocation35_spill] sm:$0xff] }
  0xac   :  { %v932_v12 = vadd.f32 %v4959_v45, %v532_v13  ;;  %4960 = vst [vmem:[#allocation59_spill] sm:$0xff] %v3260_v37  ;;  %v3263_v53 = vadd.f32 %v4961_v21, %v559_v31  ;;  %v3267_v14 = vmul.f32 %v2727_v54, %v3249_v15  ;;  %v1330_v16 = vadd.f32 %v3114_v0, %v930_v59  ;;  %v4964_v45 = vld [vmem:[#allocation32_spill] sm:$0xff] }
  0xad   :  { %v3272_v23 = vmul.f32 %v4962_v11, %v3135_v18  ;;  %v3276_v20 = vmul.f32 %v2732_v56, %v3249_v15  ;;  %v1604_v31 = vmul.f32 %v4962_v11, %v3177_v44  ;;  %v401_v21 = vmul.f32 %v4964_v45, %v3045_v57  ;;  %v4977_v11 = vld [vmem:[#allocation76_spill] sm:$0xff]  ;;  %v4986_v56 = vld [vmem:[#allocation46_spill] sm:$0xff] }
  0xae   :  { %v1332_v13 = vadd.f32 %v3120_v28, %v932_v12  ;;  %v3285_v2 = vmul.f32 %v2744_v60, %v3249_v15  ;;  %v3289_v0 = vmul.f32 %v2747_v61, %v3249_v15  ;;  %v3291_v59 = vadd.f32 %v1602_v30, %v1330_v16  ;;  %v4966_v12 = vld [vmem:[#allocation38_spill] sm:$0xff]  ;;  %v4985_v61 = vld [vmem:[#allocation45_spill] sm:$0xff] }
  0xaf   :  { %4963 = vst [vmem:[#allocation57_spill] sm:$0xff] %v3272_v23  ;;  %v513_v40 = vadd.f32 %v4965_v55, %v3093_v3  ;;  %v3299_v5 = vmul.f32 %v4966_v12, %v3047_v48  ;;  %v3303_v62 = vmul.f32 %v4968_v39, %v3135_v18  ;;  %v3307_v45 = vmul.f32 %v4968_v39, %v3177_v44  ;;  %v3309_v15 = vpop.permute.xlu1 %112  ;;  %v4973_v55 = vld [vmem:[#allocation49_spill] sm:$0xff]  ;;  %v4981_v44 = vld [vmem:[#allocation18_spill] sm:$0xff] }
  0xb0   :  { %v3295_v28 = vadd.f32 %v1604_v31, %v1332_v13  ;;  %4971 = vst [vmem:[#allocation98_spill] sm:$0xff] %v3309_v15  ;;  %v3312_v30 = vadd.f32 %v401_v21, %v2913_v27  ;;  %v4975_v13 = vld [vmem:[#allocation40_spill] sm:$0xff]  ;;  %v3323_v41 = vadd.f32 %v4977_v11, %v3093_v3  ;;  %v3325_v42 = vpop.permute.xlu0 %104  ;;  %v4980_v39 = vld [vmem:[#allocation17_spill] sm:$0xff]  ;;  %v1216_v21 = vmul.f32 %v4981_v44, %v3309_v15 }
  0xb1   :  { %4967 = vst [vmem:[#allocation73_spill] sm:$0xff] %v3299_v5  ;;  %4969 = vst [vmem:[#allocation96_spill] sm:$0xff] %v3303_v62  ;;  %v3315_v16 = vadd.f32 %v4973_v55, %v513_v40  ;;  %v3319_v31 = vmul.f32 %v4975_v13, %v3045_v57  ;;  %v4982_v62 = vld [vmem:[#allocation21_spill] sm:$0xff]  ;;  %v4983_v55 = vld [vmem:[#allocation22_spill] sm:$0xff]  ;;  %v1182_v57 = vmul.f32 %v4980_v39, %v3325_v42 }
  0xb2   :  { %4970 = vst [vmem:[#allocation97_spill] sm:$0xff] %v3307_v45  ;;  %4972 = vst [vmem:[#allocation99_spill] sm:$0xff] %v3312_v30  ;;  %v1214_v45 = vmul.f32 %v4980_v39, %v3309_v15  ;;  %v1213_v40 = vmul.f32 %v4982_v62, %v3309_v15  ;;  %v1215_v23 = vmul.f32 %v4983_v55, %v3309_v15 }
  0xb3   :  { %4974 = vst [vmem:[#allocation49_spill] sm:$0xff] %v3315_v16  ;;  %4976 = vst [vmem:[#allocation100_spill] sm:$0xff] %v3319_v31  ;;  %v1184_v11 = vmul.f32 %v4981_v44, %v3325_v42  ;;  %v1181_v3 = vmul.f32 %v4982_v62, %v3325_v42  ;;  %v1183_v13 = vmul.f32 %v4983_v55, %v3325_v42 }
  0xb4   :  { %4978 = vst [vmem:[#allocation76_spill] sm:$0xff] %v3323_v41  ;;  %4979 = vst [vmem:[#allocation101_spill] sm:$0xff] %v3325_v42  ;;  %v1342_v41 = vadd.f32 %v1214_v45, %v3195_v22  ;;  %v1344_v31 = vadd.f32 %v1216_v21, %v944_v38  ;;  %v1341_v27 = vadd.f32 %v1213_v40, %v941_v32  ;;  %v3348_v37 = vpop.permute.xlu0 %116  ;;  %v3350_v30 = vpop.permute.xlu1 %88  ;;  %v4987_v38 = vld [vmem:[#allocation41_spill] sm:$0xff]  ;;  %v4994_v21 = vmax.f32 %v3204_v25, 0.0 }
  0xb5   :  { %v1343_v5 = vadd.f32 %v1215_v23, %v943_v26  ;;  %v1310_v16 = vadd.f32 %v1182_v57, %v3110_v63  ;;  %v1312_v15 = vadd.f32 %v1184_v11, %v3125_v58  ;;  %v1309_v17 = vadd.f32 %v1181_v3, %v3128_v47  ;;  %4984 = vst [vmem:[#allocation17_spill] sm:$0xff] %v3350_v30  ;;  %v4988_v57 = vld [vmem:[#allocation43_spill] sm:$0xff]  ;;  %v4990_v23 = vld [vmem:[#allocation48_spill] sm:$0xff] }
  0xb6   :  { %v1311_v12 = vadd.f32 %v1183_v13, %v3131_v10  ;;  %v3353_v60 = vadd.f32 %v4985_v61, %v1342_v41  ;;  %v3356_v22 = vadd.f32 %v4986_v56, %v1344_v31  ;;  %v3360_v32 = vmul.f32 %v4987_v38, %v3047_v48  ;;  %v4989_v10 = vld [vmem:[#allocation47_spill] sm:$0xff] }
  0xb7   :  { %v3364_v63 = vmul.f32 %v4988_v57, %v3135_v18  ;;  %v1710_v3 = vadd.f32 %v3147_v29, %v1310_v16  ;;  %v1712_v58 = vadd.f32 %v3159_v9, %v1312_v15  ;;  %v1709_v47 = vadd.f32 %v3166_v1, %v1309_v17 }
  0xb8   :  { %v1711_v61 = vadd.f32 %v3170_v46, %v1311_v12  ;;  %v1230_v56 = vmul.f32 %v4980_v39, %v3348_v37  ;;  %v1232_v41 = vmul.f32 %v4981_v44, %v3348_v37  ;;  %v3375_v26 = vadd.f32 %v4989_v10, %v1341_v27  ;;  %v3380_v15 = vpop.permute.xlu1 %92  ;;  %v3382_v1 = vpop.permute.xlu0 %120 }
  0xb9   :  { %v3378_v45 = vadd.f32 %v4990_v23, %v1343_v5  ;;  %v1838_v13 = vmax.f32 %v1710_v3, 0.0  ;;  %v1840_v29 = vmax.f32 %v1712_v58, 0.0  ;;  %v1837_v16 = vmax.f32 %v1709_v47, 0.0  ;;  %4991 = vst [vmem:[#allocation18_spill] sm:$0xff] %v3380_v15  ;;  %4992 = vst [vmem:[#allocation21_spill] sm:$0xff] %v3382_v1 }
  0xba   :  { %v1839_v9 = vmax.f32 %v1711_v61, 0.0  ;;  %v1358_v46 = vadd.f32 %v1230_v56, %v3238_v49  ;;  %v1870_v17 = vmax.f32 %v3353_v60, 0.0  ;;  %v1872_v12 = vmax.f32 %v3356_v22, 0.0 }
  0xbb   :  { %v1229_v27 = vmul.f32 %v4982_v62, %v3348_v37  ;;  %v4993_v5 = vmax.f32 %v3202_v8, 0.0  ;;  %v1968_v40 = vpack.c.bf16 %v4994_v21, %v1840_v29  ;;  %v4995_v11 = vmax.f32 %v3206_v52, 0.0 }
  0xbc   :  { %v4996_v58 = vmax.f32 %v3208_v35, 0.0  ;;  %v1360_v49 = vadd.f32 %v1232_v41, %v3252_v6  ;;  %v1231_v22 = vmul.f32 %v4983_v55, %v3348_v37  ;;  %v846_v8 = vmul.f32 %v2676_v33, %v3350_v30 }
  0xbd   :  { %v1966_v31 = vpack.c.bf16 %v4993_v5, %v1838_v13  ;;  %v1965_v3 = vpack.c.bf16 %v4995_v11, %v1837_v16  ;;  %v1357_v60 = vadd.f32 %v1229_v27, %v3255_v36  ;;  %2074 = vmatprep.subr.bf16.mxu1 %v1968_v40  ;;  %v1869_v25 = vmax.f32 %v3375_v26, 0.0  ;;  %v3416_v10 = vpop.permute.xlu1 %148  ;;  %v4998_v16 = vld [vmem:[#allocation29_spill] sm:$0xff]  ;;  %v3435_v5 = vpop.permute.xlu0 %132  ;;  %v5001_v40 = vld [vmem:[#allocation14_spill] sm:$0xff] }
  0xbe   :  { %v1967_v47 = vpack.c.bf16 %v4996_v58, %v1839_v9  ;;  %v862_v52 = vmul.f32 %v2676_v33, %v3380_v15  ;;  %v1246_v35 = vmul.f32 %v4980_v39, %v3382_v1  ;;  %v848_v6 = vmul.f32 %v2679_v34, %v3350_v30  ;;  %4997 = vst [vmem:[#allocation22_spill] sm:$0xff] %v3416_v10 }
  0xbf   :  { %2033 = vmatprep.subr.bf16.mxu0 %v1966_v31  ;;  %v1359_v36 = vadd.f32 %v1231_v22, %v3263_v53  ;;  %v1871_v61 = vmax.f32 %v3378_v45, 0.0  ;;  %v864_v56 = vmul.f32 %v2679_v34, %v3380_v15  ;;  %v1248_v41 = vmul.f32 %v4981_v44, %v3382_v1  ;;  %5000 = vst [vmem:[#allocation45_spill] sm:$0xff] %v3435_v5 }
  0xc0   :  { %2034 = vmatpush1.bf16.msra.mxu0 %v1965_v3  ;;  %2075 = vmatpush1.bf16.msra.mxu1 %v1967_v47  ;;  %v3419_v26 = vadd.f32 %v862_v52, %v3235_v4  ;;  %v845_v23 = vmul.f32 %v2719_v51, %v3350_v30  ;;  %v861_v13 = vmul.f32 %v2719_v51, %v3380_v15  ;;  %v4999_v4 = vld [vmem:[#allocation30_spill] sm:$0xff] }
  0xc1   :  { %v1245_v53 = vmul.f32 %v4982_v62, %v3382_v1  ;;  %v1630_v45 = vmul.f32 %v2771_v7, %v3416_v10  ;;  %v1632_v29 = vmul.f32 %v2803_v24, %v3416_v10  ;;  %v1629_v9 = vmul.f32 %v4998_v16, %v3416_v10 }
  0xc2   :  { %v1631_v27 = vmul.f32 %v4999_v4, %v3416_v10  ;;  %v3438_v31 = vadd.f32 %v864_v56, %v3241_v19  ;;  %v3441_v21 = vadd.f32 %v861_v13, %v3244_v43  ;;  %v847_v11 = vmul.f32 %v5001_v40, %v3350_v30  ;;  %v3460_v13 = vpop.permute.xlu1 %197 }
  0xc3   :  { %v863_v3 = vmul.f32 %v5001_v40, %v3380_v15  ;;  %v1758_v58 = vadd.f32 %v1630_v45, %v1358_v46  ;;  %v1760_v47 = vadd.f32 %v1632_v29, %v1360_v49  ;;  %v1757_v22 = vadd.f32 %v1629_v9, %v1357_v60  ;;  %5002 = vst [vmem:[#allocation46_spill] sm:$0xff] %v3460_v13  ;;  %v5022_v15 = vld [vmem:[#allocation100_spill] sm:$0xff] }
  0xc4   :  { %v1759_v52 = vadd.f32 %v1631_v27, %v1359_v36  ;;  %v1247_v19 = vmul.f32 %v4983_v55, %v3382_v1  ;;  %v3454_v43 = vmul.f32 %v4980_v39, %v3435_v5  ;;  %v3458_v56 = vmul.f32 %v4981_v44, %v3435_v5 }
  0xc5   :  { %v3448_v18 = vadd.f32 %v863_v3, %v3247_v50  ;;  %v1886_v46 = vmax.f32 %v1758_v58, 0.0  ;;  %v1888_v49 = vmax.f32 %v1760_v47, 0.0  ;;  %v1885_v60 = vmax.f32 %v1757_v22, 0.0 }
  0xc6   :  { %v1887_v36 = vmax.f32 %v1759_v52, 0.0  ;;  %v574_v50 = vadd.f32 %v3267_v14, %v3460_v13  ;;  %v576_v45 = vadd.f32 %v3276_v20, %v3460_v13  ;;  %v573_v29 = vadd.f32 %v3285_v2, %v3460_v13  ;;  %v3470_v14 = vpop.permute.xlu1 %63 }
  0xc7   :  { %v575_v9 = vadd.f32 %v3289_v0, %v3460_v13  ;;  %v1982_v27 = vpack.c.bf16 %v1886_v46, %v1870_v17  ;;  %v1984_v3 = vpack.c.bf16 %v1888_v49, %v1872_v12  ;;  %v1981_v48 = vpack.c.bf16 %v1885_v60, %v1869_v25  ;;  %5003 = vst [vmem:[#allocation41_spill] sm:$0xff] %v3470_v14  ;;  %v5006_v0 = vld [vmem:[#allocation28_spill] sm:$0xff]  ;;  %v5007_v46 = vld [vmem:[#allocation15_spill] sm:$0xff] }
  0xc8   :  { %v1983_v1 = vpack.c.bf16 %v1887_v36, %v1871_v61  ;;  %v974_v58 = vadd.f32 %v846_v8, %v574_v50  ;;  %v976_v47 = vadd.f32 %v848_v6, %v576_v45  ;;  %v973_v22 = vadd.f32 %v845_v23, %v573_v29  ;;  %v5015_v29 = vld [vmem:[#allocation59_spill] sm:$0xff] }
  0xc9   :  { %v975_v52 = vadd.f32 %v847_v11, %v575_v9  ;;  %2035 = vmatprep.subr.bf16.mxu0 %v1982_v27  ;;  %2076 = vmatprep.subr.bf16.mxu1 %v1984_v3  ;;  %v3474_v20 = vmul.f32 %v4982_v62, %v3435_v5  ;;  %v3478_v2 = vmul.f32 %v4983_v55, %v3435_v5  ;;  %v1858_v12 = vmax.f32 %v3291_v59, 0.0  ;;  %v5008_v59 = vld [vmem:[#allocation19_spill] sm:$0xff] }
  0xca   :  { %v1186_v17 = vmul.f32 %v5006_v0, %v3325_v42  ;;  %2036 = vmatpush1.bf16.msra.mxu0 %v1981_v48  ;;  %2077 = vmatpush1.bf16.msra.mxu1 %v1983_v1  ;;  %v3483_v8 = vadd.f32 %v1246_v35, %v974_v58  ;;  %v3485_v25 = vadd.f32 %v1248_v41, %v976_v47  ;;  %v1860_v61 = vmax.f32 %v3295_v28, 0.0  ;;  %v5009_v1 = vld [vmem:[#allocation20_spill] sm:$0xff]  ;;  %v5010_v41 = vld [vmem:[#allocation90_spill] sm:$0xff]  ;;  %v5012_v28 = vld [vmem:[#allocation99_spill] sm:$0xff]  ;;  %v3505_v45 = vpop.permute.xlu1 %68 }
  0xcb   :  { %5004 = vst [vmem:[#allocation47_spill] sm:$0xff] %v3474_v20  ;;  %5005 = vst [vmem:[#allocation48_spill] sm:$0xff] %v3478_v2  ;;  %v3487_v6 = vadd.f32 %v1245_v53, %v973_v22  ;;  %v3490_v23 = vadd.f32 %v1247_v19, %v975_v52  ;;  %v478_v11 = vmul.f32 %v2727_v54, %v3470_v14  ;;  %v5011_v53 = vld [vmem:[#allocation34_spill] sm:$0xff]  ;;  %v5013_v19 = vld [vmem:[#allocation60_spill] sm:$0xff] }
  0xcc   :  { %v480_v49 = vmul.f32 %v5007_v46, %v3470_v14  ;;  %v477_v48 = vmul.f32 %v5008_v59, %v3470_v14  ;;  %v479_v35 = vmul.f32 %v5009_v1, %v3470_v14  ;;  %v1314_v60 = vadd.f32 %v1186_v17, %v5010_v41  ;;  %5014 = vst [vmem:[#allocation29_spill] sm:$0xff] %v3505_v45  ;;  %v5016_v58 = vld [vmem:[#allocation38_spill] sm:$0xff]  ;;  %v5020_v14 = vld [vmem:[#allocation73_spill] sm:$0xff] }
  0xcd   :  { %v1188_v36 = vmul.f32 %v5011_v53, %v3325_v42  ;;  %v929_v50 = vadd.f32 %v5013_v19, %v5012_v28  ;;  %v606_v9 = vadd.f32 %v478_v11, %v5015_v29  ;;  %v1185_v47 = vmul.f32 %v5016_v58, %v3325_v42  ;;  %v5018_v28 = vld [vmem:[#allocation92_spill] sm:$0xff]  ;;  %v5025_v20 = vld [vmem:[#allocation57_spill] sm:$0xff] }
  0xce   :  { %v608_v27 = vadd.f32 %v480_v49, %v5015_v29  ;;  %v605_v3 = vadd.f32 %v477_v48, %v5015_v29  ;;  %v3514_v22 = vmul.f32 %v2727_v54, %v3505_v45  ;;  %v3518_v52 = vmul.f32 %v5007_v46, %v3505_v45  ;;  %v5017_v48 = vld [vmem:[#allocation88_spill] sm:$0xff]  ;;  %v5019_v54 = vld [vmem:[#allocation49_spill] sm:$0xff] }
  0xcf   :  { %v3522_v17 = vmul.f32 %v5008_v59, %v3505_v45  ;;  %v3526_v11 = vmul.f32 %v5009_v1, %v3505_v45  ;;  %v607_v49 = vadd.f32 %v479_v35, %v5015_v29  ;;  %v1714_v41 = vadd.f32 %v5017_v48, %v1314_v60  ;;  %v5021_v46 = vld [vmem:[#allocation53_spill] sm:$0xff]  ;;  %v5023_v58 = vld [vmem:[#allocation76_spill] sm:$0xff]  ;;  %v5024_v59 = vld [vmem:[#allocation50_spill] sm:$0xff] }
  0xd0   :  { %v1316_v19 = vadd.f32 %v1188_v36, %v5018_v28  ;;  %v1313_v5 = vadd.f32 %v1185_v47, %v5019_v54  ;;  %v1329_v13 = vadd.f32 %v5020_v14, %v929_v50  ;;  %v531_v30 = vadd.f32 %v5022_v15, %v5021_v46  ;;  %v5026_v29 = vld [vmem:[#allocation96_spill] sm:$0xff]  ;;  %v5027_v48 = vld [vmem:[#allocation89_spill] sm:$0xff]  ;;  %v3543_v47 = vpop.permute.xlu1 %124 }
  0xd1   :  { %v915_v2 = vadd.f32 %v5024_v59, %v5023_v58  ;;  %v1187_v1 = vmul.f32 %v4987_v38, %v3325_v42  ;;  %v1842_v45 = vmax.f32 %v1714_v41, 0.0  ;;  %v1603_v36 = vmul.f32 %v4988_v57, %v5027_v48  ;;  %5028 = vst [vmem:[#allocation30_spill] sm:$0xff] %v3543_v47  ;;  %v5029_v14 = vld [vmem:[#allocation97_spill] sm:$0xff]  ;;  %v5032_v58 = vld [vmem:[#allocation23_spill] sm:$0xff] }
  0xd2   :  { %v1716_v35 = vadd.f32 %v5025_v20, %v1316_v19  ;;  %v1713_v60 = vadd.f32 %v5026_v29, %v1313_v5  ;;  %v1729_v50 = vadd.f32 %v5029_v14, %v1329_v13  ;;  %v5030_v28 = vld [vmem:[#allocation61_spill] sm:$0xff]  ;;  %v1262_v41 = vmul.f32 %v4980_v39, %v3543_v47 }
  0xd3   :  { %v931_v15 = vadd.f32 %v5030_v28, %v531_v30  ;;  %v1315_v54 = vadd.f32 %v1187_v1, %v915_v2  ;;  %v5031_v46 = vld [vmem:[#allocation85_spill] sm:$0xff]  ;;  %v1264_v20 = vmul.f32 %v4981_v44, %v3543_v47  ;;  %v1261_v5 = vmul.f32 %v4982_v62, %v3543_v47 }
  0xd4   :  { %v418_v59 = vmul.f32 %v5032_v58, %v5031_v46  ;;  %v1263_v29 = vmul.f32 %v4983_v55, %v3543_v47  ;;  %v3557_v19 = vpack.c.bf16 %v1858_v12, %v1842_v45  ;;  %v1844_v13 = vmax.f32 %v1716_v35, 0.0  ;;  %v3569_v45 = vpop.permute.xlu1 %96  ;;  %v5036_v35 = vld [vmem:[#allocation87_spill] sm:$0xff] }
  0xd5   :  { %v1841_v30 = vmax.f32 %v1713_v60, 0.0  ;;  %v1857_v2 = vmax.f32 %v1729_v50, 0.0  ;;  %v1390_v1 = vadd.f32 %v1262_v41, %v3419_v26  ;;  %v1392_v14 = vadd.f32 %v1264_v20, %v3438_v31  ;;  %5035 = vst [vmem:[#allocation19_spill] sm:$0xff] %v3569_v45  ;;  %v5037_v50 = vld [vmem:[#allocation93_spill] sm:$0xff]  ;;  %v5039_v31 = vld [vmem:[#allocation84_spill] sm:$0xff] }
  0xd6   :  { %v1389_v28 = vadd.f32 %v1261_v5, %v3441_v21  ;;  %v1391_v48 = vadd.f32 %v1263_v29, %v3448_v18  ;;  %v3563_v42 = vpack.c.bf16 %v1860_v61, %v1844_v13  ;;  %v1331_v57 = vadd.f32 %v3360_v32, %v931_v15  ;;  %v5038_v26 = vld [vmem:[#allocation77_spill] sm:$0xff]  ;;  %v5040_v20 = vld [vmem:[#allocation16_spill] sm:$0xff]  ;;  %v5041_v5 = vld [vmem:[#allocation98_spill] sm:$0xff] }
  0xd7   :  { %v3565_v58 = vpack.c.bf16 %v1857_v2, %v1841_v30  ;;  %v1715_v12 = vadd.f32 %v3364_v63, %v1315_v54  ;;  %v546_v60 = vadd.f32 %v418_v59, %v5036_v35  ;;  %v562_v41 = vadd.f32 %v5038_v26, %v5037_v50  ;;  %v5042_v13 = vld [vmem:[#allocation63_spill] sm:$0xff] }
  0xd8   :  { %5033 = vst [vmem:[#allocation14_spill] sm:$0xff] %v3563_v42  ;;  %v818_v21 = vmul.f32 %v5040_v20, %v5039_v31  ;;  %v1218_v18 = vmul.f32 %v5006_v0, %v5041_v5  ;;  %v878_v61 = vmul.f32 %v2676_v33, %v3569_v45  ;;  %v880_v32 = vmul.f32 %v2679_v34, %v3569_v45 }
  0xd9   :  { %5034 = vst [vmem:[#allocation15_spill] sm:$0xff] %v3565_v58  ;;  %v877_v63 = vmul.f32 %v2719_v51, %v3569_v45  ;;  %v879_v15 = vmul.f32 %v5001_v40, %v3569_v45  ;;  %v1731_v54 = vadd.f32 %v1603_v36, %v1331_v57  ;;  %v1843_v59 = vmax.f32 %v1715_v12, 0.0  ;;  %v5043_v40 = vld [vmem:[#allocation33_spill] sm:$0xff]  ;;  %v3599_v36 = vpop.permute.xlu1 %152  ;;  %v5045_v12 = vld [vmem:[#allocation31_spill] sm:$0xff] }
  0xda   :  { %v946_v29 = vadd.f32 %v818_v21, %v546_v60  ;;  %v962_v30 = vadd.f32 %v5042_v13, %v562_v41  ;;  %v3587_v2 = vadd.f32 %v878_v61, %v606_v9  ;;  %v3589_v26 = vadd.f32 %v880_v32, %v608_v27  ;;  %5044 = vst [vmem:[#allocation20_spill] sm:$0xff] %v3599_v36  ;;  %v5046_v27 = vld [vmem:[#allocation78_spill] sm:$0xff] }
  0xdb   :  { %v3591_v58 = vadd.f32 %v877_v63, %v605_v3  ;;  %v3593_v33 = vadd.f32 %v879_v15, %v607_v49  ;;  %v1859_v34 = vmax.f32 %v1731_v54, 0.0  ;;  %v1234_v51 = vmul.f32 %v5006_v0, %v3348_v37  ;;  %v5047_v3 = vld [vmem:[#allocation24_spill] sm:$0xff]  ;;  %v5048_v54 = vld [vmem:[#allocation51_spill] sm:$0xff] }
  0xdc   :  { %v1346_v47 = vadd.f32 %v1218_v18, %v946_v29  ;;  %v1634_v57 = vmul.f32 %v5043_v40, %v3416_v10  ;;  %v420_v9 = vmul.f32 %v5045_v12, %v5031_v46  ;;  %v564_v60 = vadd.f32 %v5046_v27, %v5037_v50 }
  0xdd   :  { %v820_v49 = vmul.f32 %v5047_v3, %v5039_v31  ;;  %v1220_v41 = vmul.f32 %v5011_v53, %v5041_v5  ;;  %v1646_v21 = vmul.f32 %v2771_v7, %v3599_v36  ;;  %v1648_v18 = vmul.f32 %v2803_v24, %v3599_v36  ;;  %v3625_v40 = vpop.permute.xlu1 %156 }
  0xde   :  { %v1645_v61 = vmul.f32 %v4998_v16, %v3599_v36  ;;  %v1647_v32 = vmul.f32 %v4999_v4, %v3599_v36  ;;  %v3617_v63 = vpack.c.bf16 %v1859_v34, %v1843_v59  ;;  %v1362_v15 = vadd.f32 %v1234_v51, %v962_v30  ;;  %5049 = vst [vmem:[#allocation90_spill] sm:$0xff] %v3625_v40  ;;  %v5050_v59 = vld [vmem:[#allocation64_spill] sm:$0xff] }
  0xdf   :  { %v1746_v29 = vadd.f32 %v5048_v54, %v1346_v47  ;;  %v548_v13 = vadd.f32 %v420_v9, %v5036_v35  ;;  %v1774_v27 = vadd.f32 %v1646_v21, %v3483_v8  ;;  %v1776_v45 = vadd.f32 %v1648_v18, %v3485_v25 }
  0xe0   :  { %v1773_v3 = vadd.f32 %v1645_v61, %v3487_v6  ;;  %v1775_v12 = vadd.f32 %v1647_v32, %v3490_v23  ;;  %v1762_v0 = vadd.f32 %v1634_v57, %v1362_v15  ;;  %v964_v34 = vadd.f32 %v5050_v59, %v564_v60  ;;  %v5051_v15 = vld [vmem:[#allocation35_spill] sm:$0xff] }
  0xe1   :  { %v1874_v42 = vmax.f32 %v1746_v29, 0.0  ;;  %v948_v36 = vadd.f32 %v820_v49, %v548_v13  ;;  %v1662_v47 = vmul.f32 %v2771_v7, %v3625_v40  ;;  %v1902_v30 = vmax.f32 %v1774_v27, 0.0 }
  0xe2   :  { %v1664_v8 = vmul.f32 %v2803_v24, %v3625_v40  ;;  %v1904_v51 = vmax.f32 %v1776_v45, 0.0  ;;  %v1661_v25 = vmul.f32 %v4998_v16, %v3625_v40  ;;  %v1901_v6 = vmax.f32 %v1773_v3, 0.0  ;;  %v3640_v54 = vpop.permute.xlu1 %212 }
  0xe3   :  { %v1663_v23 = vmul.f32 %v4999_v4, %v3625_v40  ;;  %v1903_v57 = vmax.f32 %v1775_v12, 0.0  ;;  %v1790_v9 = vadd.f32 %v1662_v47, %v1390_v1  ;;  %v1890_v21 = vmax.f32 %v1762_v0, 0.0  ;;  %5052 = vst [vmem:[#allocation34_spill] sm:$0xff] %v3640_v54  ;;  %v5053_v47 = vld [vmem:[#allocation68_spill] sm:$0xff] }
  0xe4   :  { %v1792_v49 = vadd.f32 %v1664_v8, %v1392_v14  ;;  %v1236_v60 = vmul.f32 %v5011_v53, %v3348_v37  ;;  %v1789_v18 = vadd.f32 %v1661_v25, %v1389_v28  ;;  %v1348_v32 = vadd.f32 %v1220_v41, %v948_v36  ;;  %v5054_v8 = vld [vmem:[#allocation69_spill] sm:$0xff] }
  0xe5   :  { %v1791_v61 = vadd.f32 %v1663_v23, %v1391_v48  ;;  %v1636_v45 = vmul.f32 %v5051_v15, %v3416_v10  ;;  %v1918_v29 = vmax.f32 %v1790_v9, 0.0  ;;  %v3642_v13 = vpack.c.bf16 %v1890_v21, %v1874_v42  ;;  %v5056_v9 = vld [vmem:[#allocation71_spill] sm:$0xff] }
  0xe6   :  { %v1920_v3 = vmax.f32 %v1792_v49, 0.0  ;;  %v1364_v27 = vadd.f32 %v1236_v60, %v964_v34  ;;  %v1917_v12 = vmax.f32 %v1789_v18, 0.0  ;;  %v622_v0 = vadd.f32 %v3514_v22, %v3640_v54  ;;  %v5055_v22 = vld [vmem:[#allocation70_spill] sm:$0xff]  ;;  %v5059_v18 = vld [vmem:[#allocation47_spill] sm:$0xff] }
  0xe7   :  { %v1919_v1 = vmax.f32 %v1791_v61, 0.0  ;;  %v624_v14 = vadd.f32 %v3518_v52, %v3640_v54  ;;  %v1998_v48 = vpack.c.bf16 %v1918_v29, %v1902_v30  ;;  %v621_v36 = vadd.f32 %v3522_v17, %v3640_v54  ;;  %v5057_v30 = vld [vmem:[#allocation52_spill] sm:$0xff]  ;;  %v3657_v17 = vpop.permute.xlu1 %128 }
  0xe8   :  { %v2000_v28 = vpack.c.bf16 %v1920_v3, %v1904_v51  ;;  %v623_v41 = vadd.f32 %v3526_v11, %v3640_v54  ;;  %v1997_v59 = vpack.c.bf16 %v1917_v12, %v1901_v6  ;;  %v1022_v34 = vadd.f32 %v5053_v47, %v622_v0  ;;  %5058 = vst [vmem:[#allocation99_spill] sm:$0xff] %v3657_v17  ;;  %v5060_v29 = vld [vmem:[#allocation48_spill] sm:$0xff]  ;;  %v5062_v0 = vld [vmem:[#allocation79_spill] sm:$0xff] }
  0xe9   :  { %v1999_v42 = vpack.c.bf16 %v1919_v1, %v1903_v57  ;;  %v1024_v25 = vadd.f32 %v5054_v8, %v624_v14  ;;  %2037 = vmatprep.subr.bf16.mxu0 %v1998_v48  ;;  %v1021_v23 = vadd.f32 %v5055_v22, %v621_v36  ;;  %v1748_v51 = vadd.f32 %v5057_v30, %v1348_v32  ;;  %v5063_v14 = vld [vmem:[#allocation25_spill] sm:$0xff] }
  0xea   :  { %2078 = vmatprep.subr.bf16.mxu1 %v2000_v28  ;;  %v1023_v52 = vadd.f32 %v5056_v9, %v623_v41  ;;  %2038 = vmatpush1.bf16.msra.mxu0 %v1997_v59  ;;  %v1422_v11 = vadd.f32 %v3454_v43, %v1022_v34  ;;  %v1764_v57 = vadd.f32 %v1636_v45, %v1364_v27 }
  0xeb   :  { %2079 = vmatpush1.bf16.msra.mxu1 %v1999_v42  ;;  %v1424_v6 = vadd.f32 %v3458_v56, %v1024_v25  ;;  %v1278_v49 = vmul.f32 %v4980_v39, %v3657_v17  ;;  %v1280_v21 = vmul.f32 %v4981_v44, %v3657_v17  ;;  %v1277_v60 = vmul.f32 %v4982_v62, %v3657_v17  ;;  %v5061_v44 = vld [vmem:[#allocation32_spill] sm:$0xff]  ;;  %v5067_v25 = vld [vmem:[#allocation65_spill] sm:$0xff] }
  0xec   :  { %v1421_v61 = vadd.f32 %v5059_v18, %v1021_v23  ;;  %v1279_v32 = vmul.f32 %v4983_v55, %v3657_v17  ;;  %v1423_v3 = vadd.f32 %v5060_v29, %v1023_v52  ;;  %v1876_v43 = vmax.f32 %v1748_v51, 0.0  ;;  %v3683_v28 = vpop.permute.xlu1 %160  ;;  %v5068_v23 = vld [vmem:[#allocation40_spill] sm:$0xff] }
  0xed   :  { %v1892_v12 = vmax.f32 %v1764_v57, 0.0  ;;  %v1406_v56 = vadd.f32 %v1278_v49, %v3587_v2  ;;  %v1408_v45 = vadd.f32 %v1280_v21, %v3589_v26  ;;  %v1405_v39 = vadd.f32 %v1277_v60, %v3591_v58  ;;  %5064 = vst [vmem:[#allocation60_spill] sm:$0xff] %v3683_v28  ;;  %v5065_v26 = vld [vmem:[#allocation38_spill] sm:$0xff]  ;;  %v5069_v52 = vld [vmem:[#allocation80_spill] sm:$0xff] }
  0xee   :  { %v417_v27 = vmul.f32 %v5061_v44, %v5031_v46  ;;  %v1407_v62 = vadd.f32 %v1279_v32, %v3593_v33  ;;  %v561_v55 = vadd.f32 %v5062_v0, %v5037_v50  ;;  %v817_v48 = vmul.f32 %v5063_v14, %v5039_v31  ;;  %v5066_v33 = vld [vmem:[#allocation39_spill] sm:$0xff] }
  0xef   :  { %v3677_v1 = vpack.c.bf16 %v1892_v12, %v1876_v43  ;;  %v1217_v58 = vmul.f32 %v5065_v26, %v5041_v5  ;;  %v1233_v36 = vmul.f32 %v5065_v26, %v3348_v37  ;;  %v1633_v41 = vmul.f32 %v5066_v33, %v3416_v10  ;;  %v5071_v43 = vld [vmem:[#allocation36_spill] sm:$0xff] }
  0xf0   :  { %v545_v2 = vadd.f32 %v417_v27, %v5036_v35  ;;  %v1678_v59 = vmul.f32 %v2771_v7, %v3683_v28  ;;  %v1680_v42 = vmul.f32 %v2803_v24, %v3683_v28  ;;  %v1677_v47 = vmul.f32 %v4998_v16, %v3683_v28  ;;  %v3705_v60 = vpop.permute.xlu1 %164 }
  0xf1   :  { %v1679_v34 = vmul.f32 %v4999_v4, %v3683_v28  ;;  %v961_v22 = vadd.f32 %v5067_v25, %v561_v55  ;;  %v419_v9 = vmul.f32 %v5068_v23, %v5031_v46  ;;  %v563_v30 = vadd.f32 %v5069_v52, %v5037_v50  ;;  %5070 = vst [vmem:[#allocation88_spill] sm:$0xff] %v3705_v60 }
  0xf2   :  { %v945_v8 = vadd.f32 %v817_v48, %v545_v2  ;;  %v1806_v51 = vadd.f32 %v1678_v59, %v1406_v56  ;;  %v1808_v57 = vadd.f32 %v1680_v42, %v1408_v45  ;;  %v1805_v49 = vadd.f32 %v1677_v47, %v1405_v39 }
  0xf3   :  { %v1807_v21 = vadd.f32 %v1679_v34, %v1407_v62  ;;  %v1361_v32 = vadd.f32 %v1233_v36, %v961_v22  ;;  %v547_v29 = vadd.f32 %v419_v9, %v5036_v35  ;;  %v819_v12 = vmul.f32 %v5071_v43, %v5039_v31  ;;  %v5072_v36 = vld [vmem:[#allocation55_spill] sm:$0xff] }
  0xf4   :  { %v1345_v18 = vadd.f32 %v1217_v58, %v945_v8  ;;  %v1694_v27 = vmul.f32 %v2771_v7, %v3705_v60  ;;  %v1934_v0 = vmax.f32 %v1806_v51, 0.0  ;;  %v1696_v55 = vmul.f32 %v2803_v24, %v3705_v60  ;;  %v5073_v8 = vld [vmem:[#allocation66_spill] sm:$0xff] }
  0xf5   :  { %v1936_v56 = vmax.f32 %v1808_v57, 0.0  ;;  %v1693_v45 = vmul.f32 %v4998_v16, %v3705_v60  ;;  %v1933_v39 = vmax.f32 %v1805_v49, 0.0  ;;  %v1695_v62 = vmul.f32 %v4999_v4, %v3705_v60 }
  0xf6   :  { %v1935_v48 = vmax.f32 %v1807_v21, 0.0  ;;  %v1822_v2 = vadd.f32 %v1694_v27, %v1422_v11  ;;  %v1824_v58 = vadd.f32 %v1696_v55, %v1424_v6  ;;  %v1745_v59 = vadd.f32 %v5072_v36, %v1345_v18  ;;  %v5077_v27 = vld [vmem:[#allocation91_spill] sm:$0xff]  ;;  %v5081_v36 = vld [vmem:[#allocation14_spill] sm:$0xff] }
  0xf7   :  { %v1761_v42 = vadd.f32 %v1633_v41, %v1361_v32  ;;  %v1821_v47 = vadd.f32 %v1693_v45, %v1421_v61  ;;  %v1823_v7 = vadd.f32 %v1695_v62, %v1423_v3  ;;  %v947_v34 = vadd.f32 %v819_v12, %v547_v29  ;;  %v5074_v61 = vld [vmem:[#allocation43_spill] sm:$0xff]  ;;  %v5078_v45 = vld [vmem:[#allocation17_spill] sm:$0xff] }
  0xf8   :  { %v963_v25 = vadd.f32 %v5073_v8, %v563_v30  ;;  %v1950_v24 = vmax.f32 %v1822_v2, 0.0  ;;  %v1952_v22 = vmax.f32 %v1824_v58, 0.0  ;;  %v1873_v9 = vmax.f32 %v1745_v59, 0.0  ;;  %v5075_v32 = vld [vmem:[#allocation95_spill] sm:$0xff]  ;;  %v5080_v2 = vld [vmem:[#allocation18_spill] sm:$0xff]  ;;  %v5085_v8 = vld [vmem:[#allocation28_spill] sm:$0xff] }
  0xf9   :  { %v1889_v52 = vmax.f32 %v1761_v42, 0.0  ;;  %v1949_v16 = vmax.f32 %v1821_v47, 0.0  ;;  %v1951_v51 = vmax.f32 %v1823_v7, 0.0  ;;  %v1219_v4 = vmul.f32 %v4987_v38, %v5041_v5  ;;  %v5076_v29 = vld [vmem:[#allocation23_spill] sm:$0xff]  ;;  %v5082_v59 = vld [vmem:[#allocation46_spill] sm:$0xff] }
  0xfa   :  { %v1235_v11 = vmul.f32 %v4987_v38, %v3348_v37  ;;  %v2014_v6 = vpack.c.bf16 %v1950_v24, %v1934_v0  ;;  %v2016_v57 = vpack.c.bf16 %v1952_v22, %v1936_v56  ;;  %v1635_v3 = vmul.f32 %v5074_v61, %v3416_v10  ;;  %v3735_v56 = vld [vmem:[%s4681_s3] sm:$0x1]  ;;  %v5083_v47 = vld [vmem:[#allocation94_spill] sm:$0xff] }
  0xfb   :  { %v1985_v41 = vpack.c.bf16 %v1889_v52, %v1873_v9  ;;  %v2013_v49 = vpack.c.bf16 %v1949_v16, %v1933_v39  ;;  %v2015_v30 = vpack.c.bf16 %v1951_v51, %v1935_v48  ;;  %v1347_v21 = vadd.f32 %v1219_v4, %v947_v34  ;;  %v5079_v39 = vld [vmem:[#allocation56_spill] sm:$0xff]  ;;  %v5084_v34 = vld [vmem:[#allocation21_spill] sm:$0xff]  ;;  %v5086_v9 = vld [vmem:[#allocation30_spill] sm:$0xff] }
  0xfc   :  { %v1363_v18 = vadd.f32 %v1235_v11, %v963_v25  ;;  %2039 = vmatprep.subr.bf16.mxu0 %v2014_v6  ;;  %2080 = vmatprep.subr.bf16.mxu1 %v2016_v57  ;;  %v450_v12 = vmul.f32 %v5076_v29, %v5075_v32  ;;  %v466_v55 = vmul.f32 %v5076_v29, %v5077_v27  ;;  %v5087_v16 = vld [vmem:[#allocation20_spill] sm:$0xff]  ;;  %v5088_v51 = vld [vmem:[#allocation33_spill] sm:$0xff]  ;;  %v5089_v57 = vld [vmem:[#allocation15_spill] sm:$0xff] }
  0xfd   :  { %v850_v0 = vmul.f32 %v5040_v20, %v5078_v45  ;;  %2040 = vmatpush1.bf16.msra.mxu0 %v2013_v49  ;;  %2081 = vmatpush1.bf16.msra.mxu1 %v2015_v30  ;;  %v1747_v62 = vadd.f32 %v5079_v39, %v1347_v21  ;;  %v866_v58 = vmul.f32 %v5040_v20, %v5080_v2  ;;  %v5090_v49 = vld [vmem:[#allocation31_spill] sm:$0xff] }
  0xfe   :  { %v1763_v48 = vadd.f32 %v1635_v3, %v1363_v18  ;;  %2115 = vmatprep.subr.bf16.mxu0 %v3557_v19  ;;  %2156 = vmatprep.subr.bf16.mxu1 %v5081_v36  ;;  %v578_v42 = vadd.f32 %v450_v12, %v5082_v59  ;;  %v594_v7 = vadd.f32 %v466_v55, %v5083_v47  ;;  %v5091_v55 = vld [vmem:[#allocation24_spill] sm:$0xff] }
  0xff   :  { %v1250_v25 = vmul.f32 %v5085_v8, %v5084_v34  ;;  %v1875_v24 = vmax.f32 %v1747_v62, 0.0  ;;  %v1266_v52 = vmul.f32 %v5085_v8, %v5086_v9  ;;  %v1650_v4 = vmul.f32 %v5088_v51, %v5087_v16 }
 0x100   :  { %v1891_v22 = vmax.f32 %v1763_v48, 0.0  ;;  %2467 = vmatmul.mubr.msk.bf16.vlgmr.msra.gmra.mrb[0].mxu0 %vm2029_vm0, %v3735_v56  ;;  %2468 = vmatmul.mubr.msk.bf16.vlgmr.msra.gmra.mrb[0].mxu1 %vm2029_vm0, %v3735_v56  ;;  %v978_v19 = vadd.f32 %v850_v0, %v578_v42  ;;  %v994_v11 = vadd.f32 %v866_v58, %v594_v7  ;;  %v1666_v6 = vmul.f32 %v5088_v51, %v3625_v40 }
 0x101   :  { %2116 = vmatpush1.bf16.msra.mxu0 %v5089_v57  ;;  %2157 = vmatpush1.bf16.msra.mxu1 %v3617_v63  ;;  %v452_v30 = vmul.f32 %v5090_v49, %v5075_v32  ;;  %v468_v21 = vmul.f32 %v5090_v49, %v5077_v27  ;;  %v852_v0 = vmul.f32 %v5091_v55, %v5078_v45  ;;  %v5092_v58 = vmov 0  }
 0x102   :  { %v1987_v3 = vpack.c.bf16 %v1891_v22, %v1875_v24  ;;  %2117 = vmatprep.subr.bf16.mxu0 %v3642_v13  ;;  %2158 = vmatprep.subr.bf16.mxu1 %v3677_v1  ;;  %v1378_v18 = vadd.f32 %v1250_v25, %v978_v19  ;;  %v1394_v12 = vadd.f32 %v1266_v52, %v994_v11 }
 0x103   :  { %v580_v39 = vadd.f32 %v452_v30, %v5082_v59  ;;  %v596_v63 = vadd.f32 %v468_v21, %v5083_v47  ;;  %v868_v62 = vmul.f32 %v5091_v55, %v5080_v2  ;;  %v1252_v48 = vmul.f32 %v5011_v53, %v5084_v34  ;;  %2147 = vmatprep.mubr.bf16.mxu0 %v5092_v58 }
 0x104   :  { %v1778_v13 = vadd.f32 %v1650_v4, %v1378_v18  ;;  %v1794_v36 = vadd.f32 %v1666_v6, %v1394_v12  ;;  %v1268_v1 = vmul.f32 %v5011_v53, %v5086_v9  ;;  %v1652_v42 = vmul.f32 %v5051_v15, %v5087_v16  ;;  %2188 = vmatprep.mubr.bf16.mxu1 %v5092_v58 }
 0x105   :  { %2118 = vmatpush1.bf16.msra.mxu0 %v1985_v41  ;;  %2159 = vmatpush1.bf16.msra.mxu1 %v1987_v3  ;;  %v980_v7 = vadd.f32 %v852_v0, %v580_v39  ;;  %v996_v25 = vadd.f32 %v868_v62, %v596_v63  ;;  %v1668_v24 = vmul.f32 %v5051_v15, %v3625_v40 }
 0x106   :  { %v1906_v22 = vmax.f32 %v1778_v13, 0.0  ;;  %v1922_v52 = vmax.f32 %v1794_v36, 0.0  ;;  %v449_v4 = vmul.f32 %v5061_v44, %v5075_v32  ;;  %v465_v19 = vmul.f32 %v5061_v44, %v5077_v27 }
 0x107   :  { %v1380_v11 = vadd.f32 %v1252_v48, %v980_v7  ;;  %v1396_v6 = vadd.f32 %v1268_v1, %v996_v25  ;;  %v849_v57 = vmul.f32 %v5063_v14, %v5078_v45  ;;  %v865_v41 = vmul.f32 %v5063_v14, %v5080_v2 }
 0x108   :  { %v2002_v3 = vpack.c.bf16 %v1922_v52, %v1906_v22  ;;  %v577_v30 = vadd.f32 %v449_v4, %v5082_v59  ;;  %v593_v21 = vadd.f32 %v465_v19, %v5083_v47  ;;  %v1249_v18 = vmul.f32 %v5065_v26, %v5084_v34 }
 0x109   :  { %v1780_v12 = vadd.f32 %v1652_v42, %v1380_v11  ;;  %v1796_v0 = vadd.f32 %v1668_v24, %v1396_v6  ;;  %v1265_v39 = vmul.f32 %v5065_v26, %v5086_v9  ;;  %v1649_v63 = vmul.f32 %v5066_v33, %v5087_v16 }
 0x10a   :  { %2119 = vmatprep.subr.bf16.mxu0 %v2002_v3  ;;  %v977_v62 = vadd.f32 %v849_v57, %v577_v30  ;;  %v993_v48 = vadd.f32 %v865_v41, %v593_v21  ;;  %v1665_v13 = vmul.f32 %v5066_v33, %v3625_v40  ;;  %v451_v36 = vmul.f32 %v5068_v23, %v5075_v32 }
 0x10b   :  { %v1908_v1 = vmax.f32 %v1780_v12, 0.0  ;;  %v1924_v7 = vmax.f32 %v1796_v0, 0.0  ;;  %v467_v42 = vmul.f32 %v5068_v23, %v5077_v27  ;;  %v851_v25 = vmul.f32 %v5071_v43, %v5078_v45  ;;  %v5093_v0 = vld [vmem:[#allocation41_spill] sm:$0xff] }
 0x10c   :  { %v1377_v24 = vadd.f32 %v1249_v18, %v977_v62  ;;  %v1393_v22 = vadd.f32 %v1265_v39, %v993_v48  ;;  %v579_v52 = vadd.f32 %v451_v36, %v5082_v59  ;;  %v867_v4 = vmul.f32 %v5071_v43, %v5080_v2  ;;  %v5094_v62 = vld [vmem:[#allocation29_spill] sm:$0xff] }
 0x10d   :  { %v2004_v19 = vpack.c.bf16 %v1924_v7, %v1908_v1  ;;  %v595_v11 = vadd.f32 %v467_v42, %v5083_v47  ;;  %v1251_v6 = vmul.f32 %v4987_v38, %v5084_v34  ;;  %v1267_v57 = vmul.f32 %v4987_v38, %v5086_v9 }
 0x10e   :  { %v1777_v41 = vadd.f32 %v1649_v63, %v1377_v24  ;;  %v1793_v3 = vadd.f32 %v1665_v13, %v1393_v22  ;;  %v979_v30 = vadd.f32 %v851_v25, %v579_v52  ;;  %v1651_v21 = vmul.f32 %v5074_v61, %v5087_v16  ;;  %v5095_v63 = vld [vmem:[#allocation19_spill] sm:$0xff]  ;;  %v5097_v52 = vld [vmem:[#allocation54_spill] sm:$0xff] }
 0x10f   :  { %2160 = vmatprep.subr.bf16.mxu1 %v2004_v19  ;;  %v995_v18 = vadd.f32 %v867_v4, %v595_v11  ;;  %v1667_v12 = vmul.f32 %v5074_v61, %v3625_v40  ;;  %v482_v39 = vmul.f32 %v5076_v29, %v5093_v0  ;;  %v498_v48 = vmul.f32 %v5076_v29, %v5094_v62  ;;  %v5096_v25 = vld [vmem:[#allocation59_spill] sm:$0xff]  ;;  %v5098_v29 = vld [vmem:[#allocation45_spill] sm:$0xff] }
 0x110   :  { %v1905_v36 = vmax.f32 %v1777_v41, 0.0  ;;  %v1921_v1 = vmax.f32 %v1793_v3, 0.0  ;;  %v1379_v7 = vadd.f32 %v1251_v6, %v979_v30  ;;  %v882_v13 = vmul.f32 %v5040_v20, %v5095_v63 }
 0x111   :  { %v1395_v42 = vadd.f32 %v1267_v57, %v995_v18  ;;  %v610_v24 = vadd.f32 %v482_v39, %v5096_v25  ;;  %v626_v22 = vadd.f32 %v498_v48, %v3640_v54  ;;  %v898_v4 = vmul.f32 %v5040_v20, %v5097_v52 }
 0x112   :  { %v2001_v19 = vpack.c.bf16 %v1921_v1, %v1905_v36  ;;  %v1779_v11 = vadd.f32 %v1651_v21, %v1379_v7  ;;  %v1282_v40 = vmul.f32 %v5085_v8, %v3657_v17  ;;  %v1298_v41 = vmul.f32 %v5085_v8, %v5098_v29 }
 0x113   :  { %v1795_v6 = vadd.f32 %v1667_v12, %v1395_v42  ;;  %v1010_v3 = vadd.f32 %v882_v13, %v610_v24  ;;  %v1026_v30 = vadd.f32 %v898_v4, %v626_v22  ;;  %v1682_v57 = vmul.f32 %v5088_v51, %v3683_v28 }
 0x114   :  { %2120 = vmatpush1.bf16.msra.mxu0 %v2001_v19  ;;  %v1907_v18 = vmax.f32 %v1779_v11, 0.0  ;;  %v1698_v39 = vmul.f32 %v5088_v51, %v3705_v60  ;;  %v484_v20 = vmul.f32 %v5090_v49, %v5093_v0  ;;  %v500_v21 = vmul.f32 %v5090_v49, %v5094_v62 }
 0x115   :  { %v1923_v48 = vmax.f32 %v1795_v6, 0.0  ;;  %v1410_v36 = vadd.f32 %v1282_v40, %v1010_v3  ;;  %v1426_v8 = vadd.f32 %v1298_v41, %v1026_v30  ;;  %v884_v12 = vmul.f32 %v5091_v55, %v5095_v63 }
 0x116   :  { %v612_v1 = vadd.f32 %v484_v20, %v5096_v25  ;;  %v628_v7 = vadd.f32 %v500_v21, %v3640_v54  ;;  %v900_v13 = vmul.f32 %v5091_v55, %v5097_v52  ;;  %v1284_v51 = vmul.f32 %v5011_v53, %v3657_v17 }
 0x117   :  { %v2003_v42 = vpack.c.bf16 %v1923_v48, %v1907_v18  ;;  %v1810_v24 = vadd.f32 %v1682_v57, %v1410_v36  ;;  %v1826_v22 = vadd.f32 %v1698_v39, %v1426_v8  ;;  %v1300_v40 = vmul.f32 %v5011_v53, %v5098_v29 }
 0x118   :  { %v1012_v49 = vadd.f32 %v884_v12, %v612_v1  ;;  %v1028_v4 = vadd.f32 %v900_v13, %v628_v7  ;;  %v1684_v19 = vmul.f32 %v5051_v15, %v3683_v28  ;;  %v1700_v11 = vmul.f32 %v5051_v15, %v3705_v60 }
 0x119   :  { %2161 = vmatpush1.bf16.msra.mxu1 %v2003_v42  ;;  %v1938_v41 = vmax.f32 %v1810_v24, 0.0  ;;  %v1954_v55 = vmax.f32 %v1826_v22, 0.0  ;;  %v481_v6 = vmul.f32 %v5061_v44, %v5093_v0  ;;  %v497_v3 = vmul.f32 %v5061_v44, %v5094_v62 }
 0x11a   :  { %v1412_v30 = vadd.f32 %v1284_v51, %v1012_v49  ;;  %v1428_v57 = vadd.f32 %v1300_v40, %v1028_v4  ;;  %v881_v53 = vmul.f32 %v5063_v14, %v5095_v63  ;;  %v897_v18 = vmul.f32 %v5063_v14, %v5097_v52 }
 0x11b   :  { %v2018_v39 = vpack.c.bf16 %v1954_v55, %v1938_v41  ;;  %v609_v15 = vadd.f32 %v481_v6, %v5096_v25  ;;  %v625_v20 = vadd.f32 %v497_v3, %v3640_v54  ;;  %v1281_v21 = vmul.f32 %v5065_v26, %v3657_v17 }
 0x11c   :  { %v1812_v48 = vadd.f32 %v1684_v19, %v1412_v30  ;;  %v1828_v36 = vadd.f32 %v1700_v11, %v1428_v57  ;;  %v1297_v44 = vmul.f32 %v5065_v26, %v5098_v29  ;;  %v1681_v8 = vmul.f32 %v5066_v33, %v3683_v28  ;;  %v5099_v30 = vld [vmem:[#allocation74_spill] sm:$0xff]  ;;  %v5100_v57 = vld [vmem:[#allocation44_spill] sm:$0xff] }
 0x11d   :  { %2121 = vmatprep.subr.bf16.mxu0 %v2018_v39  ;;  %v1009_v12 = vadd.f32 %v881_v53, %v609_v15  ;;  %v1025_v1 = vadd.f32 %v897_v18, %v625_v20  ;;  %v1697_v14 = vmul.f32 %v5066_v33, %v3705_v60  ;;  %v483_v7 = vmul.f32 %v5068_v23, %v5093_v0  ;;  %v5101_v18 = vld [vmem:[#allocation83_spill] sm:$0xff]  ;;  %v5102_v39 = vld [vmem:[#allocation81_spill] sm:$0xff] }
 0x11e   :  { %v1940_v13 = vmax.f32 %v1812_v48, 0.0  ;;  %v1956_v51 = vmax.f32 %v1828_v36, 0.0  ;;  %v499_v42 = vmul.f32 %v5068_v23, %v5094_v62  ;;  %v883_v26 = vmul.f32 %v5071_v43, %v5095_v63  ;;  %v3895_v48 = vld [vmem:[%s4678_s0 + $0x20] sm:$0xff]  ;;  %v5103_v36 = vld [vmem:[#allocation10_spill] sm:$0xff] }
 0x11f   :  { %v1409_v24 = vadd.f32 %v1281_v21, %v1009_v12  ;;  %v1425_v22 = vadd.f32 %v1297_v44, %v1025_v1  ;;  %v611_v40 = vadd.f32 %v483_v7, %v5096_v25  ;;  %v899_v49 = vmul.f32 %v5071_v43, %v5097_v52  ;;  %v5104_v12 = vld [vmem:[#allocation53_spill] sm:$0xff] }
 0x120   :  { %v2020_v4 = vpack.c.bf16 %v1956_v51, %v1940_v13  ;;  %v627_v33 = vadd.f32 %v499_v42, %v3640_v54  ;;  %v1283_v19 = vmul.f32 %v4987_v38, %v3657_v17  ;;  %v1299_v11 = vmul.f32 %v4987_v38, %v5098_v29  ;;  %v5106_v13 = vld [vmem:[#allocation12_spill] sm:$0xff] }
 0x121   :  { %v1809_v23 = vadd.f32 %v1681_v8, %v1409_v24  ;;  %v1825_v41 = vadd.f32 %v1697_v14, %v1425_v22  ;;  %v1011_v55 = vadd.f32 %v883_v26, %v611_v40  ;;  %v1683_v6 = vmul.f32 %v5074_v61, %v3683_v28  ;;  %v5105_v14 = vld [vmem:[#allocation72_spill] sm:$0xff]  ;;  %v5107_v24 = vld [vmem:[#allocation11_spill] sm:$0xff]  ;;  %v5120_v28 = vld [vmem:[#allocation37_spill] sm:$0xff] }
 0x122   :  { %2162 = vmatprep.subr.bf16.mxu1 %v2020_v4  ;;  %v1027_v3 = vadd.f32 %v899_v49, %v627_v33  ;;  %v1699_v43 = vmul.f32 %v5074_v61, %v3705_v60  ;;  %v406_v53 = vmul.f32 %v5100_v57, %v5099_v30  ;;  %v518_v15 = vadd.f32 %v5102_v39, %v5101_v18  ;;  %v3902_v61 = vld [vmem:[%s4678_s0 + $0x28] sm:$0xff]  ;;  %v5108_v40 = vld [vmem:[#allocation8_spill] sm:$0xff]  ;;  %v5113_v39 = vld [vmem:[#allocation75_spill] sm:$0xff] }
 0x123   :  { %v1937_v20 = vmax.f32 %v1809_v23, 0.0  ;;  %v1953_v21 = vmax.f32 %v1825_v41, 0.0  ;;  %v1411_v38 = vadd.f32 %v1283_v19, %v1011_v55  ;;  %v1076_v44 = vrot.slane %v3895_v48, %v5103_v36  ;;  %v5109_v33 = vld [vmem:[#allocation82_spill] sm:$0xff]  ;;  %v5110_v23 = vld [vmem:[#allocation13_spill] sm:$0xff] }
 0x124   :  { %v1427_v8 = vadd.f32 %v1299_v11, %v1027_v3  ;;  %v534_v1 = vadd.f32 %v406_v53, %v5104_v12  ;;  %v918_v7 = vadd.f32 %v5105_v14, %v518_v15  ;;  %v1476_v51 = vrot.slane %v3895_v48, %v5106_v13  ;;  %v5111_v41 = vld [vmem:[#allocation6_spill] sm:$0xff]  ;;  %v5112_v53 = vld [vmem:[#allocation101_spill] sm:$0xff]  ;;  %v5117_v14 = vld [vmem:[#allocation7_spill] sm:$0xff] }
 0x125   :  { %v2017_v42 = vpack.c.bf16 %v1953_v21, %v1937_v20  ;;  %v1811_v26 = vadd.f32 %v1683_v6, %v1411_v38  ;;  %v3909_v22 = vrot.slane %v1076_v44, %v5107_v24  ;;  %v284_v49 = vrot.slane %v3902_v61, %v5108_v40  ;;  %v5114_v20 = vld [vmem:[#allocation9_spill] sm:$0xff]  ;;  %v5115_v38 = vld [vmem:[#allocation86_spill] sm:$0xff] }
 0x126   :  { %v1827_v4 = vadd.f32 %v1699_v43, %v1427_v8  ;;  %v934_v19 = vadd.f32 %v5109_v33, %v534_v1  ;;  %v3915_v11 = vrot.slane %v1476_v51, %v5110_v23  ;;  %v684_v55 = vrot.slane %v3902_v61, %v5111_v41  ;;  %v5116_v8 = vld [vmem:[#allocation89_spill] sm:$0xff]  ;;  %v5118_v33 = vld [vmem:[#allocation67_spill] sm:$0xff]  ;;  %v5119_v60 = vld [vmem:[#allocation26_spill] sm:$0xff] }
 0x127   :  { %2122 = vmatpush1.bf16.msra.mxu0 %v2017_v42  ;;  %v1939_v3 = vmax.f32 %v1811_v26, 0.0  ;;  %v1190_v6 = vmul.f32 %v3909_v22, %v5112_v53  ;;  %v1206_v15 = vmul.f32 %v3909_v22, %v5113_v39  ;;  %v3924_v21 = vrot.slane %v284_v49, %v5114_v20 }
 0x128   :  { %v1955_v43 = vmax.f32 %v1827_v4, 0.0  ;;  %v1590_v44 = vmul.f32 %v3915_v11, %v5115_v38  ;;  %v1606_v1 = vmul.f32 %v3915_v11, %v5116_v8  ;;  %v3931_v51 = vrot.slane %v684_v55, %v5117_v14 }
 0x129   :  { %v1318_v42 = vadd.f32 %v1190_v6, %v918_v7  ;;  %v1334_v26 = vadd.f32 %v1206_v15, %v934_v19  ;;  %v392_v41 = vmul.f32 %v3924_v21, %v5118_v33  ;;  %v408_v40 = vmul.f32 %v3924_v21, %v5099_v30 }
 0x12a   :  { %v2019_v49 = vpack.c.bf16 %v1955_v43, %v1939_v3  ;;  %v792_v4 = vmul.f32 %v3931_v51, %v5119_v60  ;;  %v808_v29 = vmul.f32 %v3931_v51, %v5120_v28  ;;  %v1084_v17 = vrot.slane %v3902_v61, %v5103_v36  ;;  %2469 = vmatmul.mubr.msk.bf16.vlgmr.msra.gmra.mrb[4].mxu0 %vm2029_vm0, %v3735_v56 }
 0x12b   :  { %v1718_v7 = vadd.f32 %v1590_v44, %v1318_v42  ;;  %v1734_v19 = vadd.f32 %v1606_v1, %v1334_v26  ;;  %v520_v55 = vadd.f32 %v392_v41, %v5101_v18  ;;  %v536_v6 = vadd.f32 %v408_v40, %v5104_v12  ;;  %2229 = vmatprep.mubr.bf16.mxu0 %v5092_v58 }
 0x12c   :  { %2163 = vmatpush1.bf16.msra.mxu1 %v2019_v49  ;;  %v3949_v3 = vrot.slane %v1084_v17, %v5107_v24  ;;  %v1484_v15 = vrot.slane %v3902_v61, %v5106_v13  ;;  %v272_v43 = vrot.slane %v3895_v48, %v5114_v20  ;;  %v672_v44 = vrot.slane %v3895_v48, %v5117_v14 }
 0x12d   :  { %v1846_v1 = vmax.f32 %v1718_v7, 0.0  ;;  %v1862_v42 = vmax.f32 %v1734_v19, 0.0  ;;  %v920_v41 = vadd.f32 %v792_v4, %v520_v55  ;;  %v936_v26 = vadd.f32 %v808_v29, %v536_v6 }
 0x12e   :  { %v1192_v40 = vmul.f32 %v3949_v3, %v5112_v53  ;;  %v1208_v17 = vmul.f32 %v3949_v3, %v5113_v39  ;;  %v3962_v49 = vrot.slane %v1484_v15, %v5110_v23  ;;  %v3965_v13 = vrot.slane %v272_v43, %v5114_v20 }
 0x12f   :  { %v1974_v36 = vpack.c.bf16 %v1862_v42, %v1846_v1  ;;  %2470 = vmatmul.mubr.msk.bf16.vlgmr.msra.gmra.mrb[4].mxu1 %vm2029_vm0, %v3735_v56  ;;  %v3970_v7 = vrot.slane %v672_v44, %v5117_v14  ;;  %v1072_v29 = vrot.slane %v3895_v48, %v5107_v24  ;;  %v1472_v4 = vrot.slane %v3895_v48, %v5110_v23 }
 0x130   :  { %v1320_v19 = vadd.f32 %v1192_v40, %v920_v41  ;;  %v1336_v55 = vadd.f32 %v1208_v17, %v936_v26  ;;  %v1592_v6 = vmul.f32 %v3962_v49, %v5115_v38  ;;  %v1608_v15 = vmul.f32 %v3962_v49, %v5116_v8  ;;  %2270 = vmatprep.mubr.bf16.mxu1 %v5092_v58 }
 0x131   :  { %2197 = vmatprep.subr.bf16.mxu0 %v1974_v36  ;;  %v389_v56 = vmul.f32 %v3965_v13, %v5118_v33  ;;  %v405_v43 = vmul.f32 %v3965_v13, %v5099_v30  ;;  %v789_v48 = vmul.f32 %v3970_v7, %v5119_v60  ;;  %v805_v44 = vmul.f32 %v3970_v7, %v5120_v28 }
 0x132   :  { %v1720_v1 = vadd.f32 %v1592_v6, %v1320_v19  ;;  %v1736_v42 = vadd.f32 %v1608_v15, %v1336_v55  ;;  %v3990_v41 = vrot.slane %v1072_v29, %v5107_v24  ;;  %v3993_v26 = vrot.slane %v1472_v4, %v5110_v23 }
 0x133   :  { %v517_v36 = vadd.f32 %v389_v56, %v5101_v18  ;;  %v533_v40 = vadd.f32 %v405_v43, %v5104_v12  ;;  %v280_v17 = vrot.slane %v3902_v61, %v5114_v20  ;;  %v680_v58 = vrot.slane %v3902_v61, %v5117_v14 }
 0x134   :  { %v1848_v54 = vmax.f32 %v1720_v1, 0.0  ;;  %v1864_v52 = vmax.f32 %v1736_v42, 0.0  ;;  %v1189_v19 = vmul.f32 %v3990_v41, %v5112_v53  ;;  %v1205_v29 = vmul.f32 %v3990_v41, %v5113_v39 }
 0x135   :  { %v917_v4 = vadd.f32 %v789_v48, %v517_v36  ;;  %v933_v55 = vadd.f32 %v805_v44, %v533_v40  ;;  %v1589_v6 = vmul.f32 %v3993_v26, %v5115_v38  ;;  %v1605_v15 = vmul.f32 %v3993_v26, %v5116_v8 }
 0x136   :  { %v1976_v56 = vpack.c.bf16 %v1864_v52, %v1848_v54  ;;  %v4010_v43 = vrot.slane %v280_v17, %v5114_v20  ;;  %v4013_v1 = vrot.slane %v680_v58, %v5117_v14  ;;  %v1080_v42 = vrot.slane %v3902_v61, %v5107_v24 }
 0x137   :  { %v1317_v25 = vadd.f32 %v1189_v19, %v917_v4  ;;  %v1333_v63 = vadd.f32 %v1205_v29, %v933_v55  ;;  %v1480_v48 = vrot.slane %v3902_v61, %v5110_v23  ;;  %v422_v44 = vmul.f32 %v5100_v57, %v5031_v46  ;;  %v5121_v55 = vld [vmem:[#allocation62_spill] sm:$0xff] }
 0x138   :  { %2238 = vmatprep.subr.bf16.mxu1 %v1976_v56  ;;  %v391_v54 = vmul.f32 %v4010_v43, %v5118_v33  ;;  %v407_v52 = vmul.f32 %v4010_v43, %v5099_v30  ;;  %v791_v58 = vmul.f32 %v4013_v1, %v5119_v60  ;;  %v807_v36 = vmul.f32 %v4013_v1, %v5120_v28 }
 0x139   :  { %v1717_v40 = vadd.f32 %v1589_v6, %v1317_v25  ;;  %v1733_v17 = vadd.f32 %v1605_v15, %v1333_v63  ;;  %v4030_v61 = vrot.slane %v1080_v42, %v5107_v24  ;;  %v4033_v19 = vrot.slane %v1480_v48, %v5110_v23 }
 0x13a   :  { %v519_v29 = vadd.f32 %v391_v54, %v5101_v18  ;;  %v535_v4 = vadd.f32 %v407_v52, %v5104_v12  ;;  %v438_v56 = vmul.f32 %v5100_v57, %v5121_v55  ;;  %v550_v60 = vadd.f32 %v422_v44, %v5036_v35  ;;  %v5122_v44 = vld [vmem:[#allocation58_spill] sm:$0xff] }
 0x13b   :  { %v1845_v30 = vmax.f32 %v1717_v40, 0.0  ;;  %v1861_v33 = vmax.f32 %v1733_v17, 0.0  ;;  %v1191_v63 = vmul.f32 %v4030_v61, %v5112_v53  ;;  %v1207_v25 = vmul.f32 %v4030_v61, %v5113_v39  ;;  %v5123_v17 = vld [vmem:[#allocation42_spill] sm:$0xff] }
 0x13c   :  { %v919_v6 = vadd.f32 %v791_v58, %v519_v29  ;;  %v935_v15 = vadd.f32 %v807_v36, %v535_v4  ;;  %v1591_v42 = vmul.f32 %v4033_v19, %v5115_v38  ;;  %v1607_v48 = vmul.f32 %v4033_v19, %v5116_v8 }
 0x13d   :  { %v1973_v54 = vpack.c.bf16 %v1861_v33, %v1845_v30  ;;  %v566_v52 = vadd.f32 %v438_v56, %v5037_v50  ;;  %v822_v40 = vmul.f32 %v5122_v44, %v5039_v31  ;;  %v838_v23 = vmul.f32 %v5122_v44, %v5123_v17  ;;  %v5124_v30 = vld [vmem:[#allocation27_spill] sm:$0xff] }
 0x13e   :  { %v1319_v12 = vadd.f32 %v1191_v63, %v919_v6  ;;  %v1335_v18 = vadd.f32 %v1207_v25, %v935_v15  ;;  %v1222_v58 = vmul.f32 %v3909_v22, %v5041_v5  ;;  %v1238_v36 = vmul.f32 %v3909_v22, %v3348_v37 }
 0x13f   :  { %2198 = vmatpush1.bf16.msra.mxu0 %v1973_v54  ;;  %v950_v29 = vadd.f32 %v822_v40, %v550_v60  ;;  %v966_v4 = vadd.f32 %v838_v23, %v566_v52  ;;  %v1622_v33 = vmul.f32 %v3915_v11, %v5124_v30  ;;  %v1638_v56 = vmul.f32 %v3915_v11, %v3416_v10 }
 0x140   :  { %v1719_v8 = vadd.f32 %v1591_v42, %v1319_v12  ;;  %v1735_v38 = vadd.f32 %v1607_v48, %v1335_v18  ;;  %v424_v63 = vmul.f32 %v3924_v21, %v5031_v46  ;;  %v440_v25 = vmul.f32 %v3924_v21, %v5121_v55 }
 0x141   :  { %v1350_v6 = vadd.f32 %v1222_v58, %v950_v29  ;;  %v1366_v15 = vadd.f32 %v1238_v36, %v966_v4  ;;  %v824_v60 = vmul.f32 %v3931_v51, %v5039_v31  ;;  %v840_v23 = vmul.f32 %v3931_v51, %v5123_v17 }
 0x142   :  { %v1847_v54 = vmax.f32 %v1719_v8, 0.0  ;;  %v1863_v52 = vmax.f32 %v1735_v38, 0.0  ;;  %v552_v40 = vadd.f32 %v424_v63, %v5036_v35  ;;  %v568_v18 = vadd.f32 %v440_v25, %v5037_v50 }
 0x143   :  { %v1750_v12 = vadd.f32 %v1622_v33, %v1350_v6  ;;  %v1766_v42 = vadd.f32 %v1638_v56, %v1366_v15  ;;  %v1224_v48 = vmul.f32 %v3949_v3, %v5041_v5  ;;  %v1240_v58 = vmul.f32 %v3949_v3, %v3348_v37 }
 0x144   :  { %v1975_v36 = vpack.c.bf16 %v1863_v52, %v1847_v54  ;;  %v952_v29 = vadd.f32 %v824_v60, %v552_v40  ;;  %v968_v4 = vadd.f32 %v840_v23, %v568_v18  ;;  %v1624_v39 = vmul.f32 %v3962_v49, %v5124_v30 }
 0x145   :  { %v1878_v8 = vmax.f32 %v1750_v12, 0.0  ;;  %v1894_v38 = vmax.f32 %v1766_v42, 0.0  ;;  %v1640_v63 = vmul.f32 %v3962_v49, %v3416_v10  ;;  %v421_v33 = vmul.f32 %v3965_v13, %v5031_v46 }
 0x146   :  { %2239 = vmatpush1.bf16.msra.mxu1 %v1975_v36  ;;  %v1352_v56 = vadd.f32 %v1224_v48, %v952_v29  ;;  %v1368_v25 = vadd.f32 %v1240_v58, %v968_v4  ;;  %v437_v6 = vmul.f32 %v3965_v13, %v5121_v55  ;;  %v821_v15 = vmul.f32 %v3970_v7, %v5039_v31 }
 0x147   :  { %v1990_v60 = vpack.c.bf16 %v1894_v38, %v1878_v8  ;;  %v549_v23 = vadd.f32 %v421_v33, %v5036_v35  ;;  %v837_v54 = vmul.f32 %v3970_v7, %v5123_v17  ;;  %v1221_v52 = vmul.f32 %v3990_v41, %v5041_v5 }
 0x148   :  { %v1752_v40 = vadd.f32 %v1624_v39, %v1352_v56  ;;  %v1768_v18 = vadd.f32 %v1640_v63, %v1368_v25  ;;  %v565_v12 = vadd.f32 %v437_v6, %v5037_v50  ;;  %v1237_v42 = vmul.f32 %v3990_v41, %v3348_v37 }
 0x149   :  { %2199 = vmatprep.subr.bf16.mxu0 %v1990_v60  ;;  %v949_v48 = vadd.f32 %v821_v15, %v549_v23  ;;  %v1621_v58 = vmul.f32 %v3993_v26, %v5124_v30  ;;  %v1637_v36 = vmul.f32 %v3993_v26, %v3416_v10  ;;  %v423_v29 = vmul.f32 %v4010_v43, %v5031_v46 }
 0x14a   :  { %v1880_v4 = vmax.f32 %v1752_v40, 0.0  ;;  %v1896_v8 = vmax.f32 %v1768_v18, 0.0  ;;  %v965_v39 = vadd.f32 %v837_v54, %v565_v12  ;;  %v439_v38 = vmul.f32 %v4010_v43, %v5121_v55 }
 0x14b   :  { %v1349_v63 = vadd.f32 %v1221_v52, %v949_v48  ;;  %v551_v33 = vadd.f32 %v423_v29, %v5036_v35  ;;  %v823_v56 = vmul.f32 %v4013_v1, %v5039_v31  ;;  %v839_v25 = vmul.f32 %v4013_v1, %v5123_v17 }
 0x14c   :  { %v1992_v6 = vpack.c.bf16 %v1896_v8, %v1880_v4  ;;  %v1365_v15 = vadd.f32 %v1237_v42, %v965_v39  ;;  %v567_v60 = vadd.f32 %v439_v38, %v5037_v50  ;;  %v1223_v23 = vmul.f32 %v4030_v61, %v5041_v5 }
 0x14d   :  { %v1749_v54 = vadd.f32 %v1621_v58, %v1349_v63  ;;  %v951_v40 = vadd.f32 %v823_v56, %v551_v33  ;;  %v1239_v52 = vmul.f32 %v4030_v61, %v3348_v37  ;;  %v1623_v18 = vmul.f32 %v4033_v19, %v5124_v30 }
 0x14e   :  { %2240 = vmatprep.subr.bf16.mxu1 %v1992_v6  ;;  %v1765_v12 = vadd.f32 %v1637_v36, %v1365_v15  ;;  %v967_v48 = vadd.f32 %v839_v25, %v567_v60  ;;  %v1639_v29 = vmul.f32 %v4033_v19, %v3416_v10  ;;  %v454_v42 = vmul.f32 %v5100_v57, %v5075_v32 }
 0x14f   :  { %v1877_v4 = vmax.f32 %v1749_v54, 0.0  ;;  %v1351_v8 = vadd.f32 %v1223_v23, %v951_v40  ;;  %v470_v58 = vmul.f32 %v5100_v57, %v5077_v27  ;;  %v854_v39 = vmul.f32 %v5122_v44, %v5078_v45 }
 0x150   :  { %v1893_v38 = vmax.f32 %v1765_v12, 0.0  ;;  %v1367_v63 = vadd.f32 %v1239_v52, %v967_v48  ;;  %v582_v33 = vadd.f32 %v454_v42, %v5082_v59  ;;  %v870_v36 = vmul.f32 %v5122_v44, %v5080_v2  ;;  %v5125_v48 = vld [vmem:[#allocation90_spill] sm:$0xff] }
 0x151   :  { %v1751_v56 = vadd.f32 %v1623_v18, %v1351_v8  ;;  %v598_v25 = vadd.f32 %v470_v58, %v5083_v47  ;;  %v1254_v6 = vmul.f32 %v3909_v22, %v5084_v34  ;;  %v1270_v15 = vmul.f32 %v3909_v22, %v5086_v9 }
 0x152   :  { %v1989_v60 = vpack.c.bf16 %v1893_v38, %v1877_v4  ;;  %v1767_v23 = vadd.f32 %v1639_v29, %v1367_v63  ;;  %v982_v54 = vadd.f32 %v854_v39, %v582_v33  ;;  %v1654_v40 = vmul.f32 %v3915_v11, %v5087_v16  ;;  %v215_v33 = vld [vmem:[%s4682_s4] sm:$0x3] }
 0x153   :  { %v1879_v52 = vmax.f32 %v1751_v56, 0.0  ;;  %v998_v12 = vadd.f32 %v870_v36, %v598_v25  ;;  %v1670_v42 = vmul.f32 %v3915_v11, %v5125_v48  ;;  %v456_v18 = vmul.f32 %v3924_v21, %v5075_v32  ;;  %218 = vperm.xlu0 %2501, %v215_v33  }
 0x154   :  { %2200 = vmatpush1.bf16.msra.mxu0 %v1989_v60  ;;  %v1895_v8 = vmax.f32 %v1767_v23, 0.0  ;;  %v1382_v58 = vadd.f32 %v1254_v6, %v982_v54  ;;  %v472_v10 = vmul.f32 %v3924_v21, %v5077_v27  ;;  %v856_v29 = vmul.f32 %v3931_v51, %v5078_v45 }
 0x155   :  { %v1398_v4 = vadd.f32 %v1270_v15, %v998_v12  ;;  %v584_v39 = vadd.f32 %v456_v18, %v5082_v59  ;;  %v872_v38 = vmul.f32 %v3931_v51, %v5080_v2  ;;  %v1256_v63 = vmul.f32 %v3949_v3, %v5084_v34 }
 0x156   :  { %v1991_v36 = vpack.c.bf16 %v1895_v8, %v1879_v52  ;;  %v1782_v56 = vadd.f32 %v1654_v40, %v1382_v58  ;;  %v600_v25 = vadd.f32 %v472_v10, %v5083_v47  ;;  %v1272_v6 = vmul.f32 %v3949_v3, %v5086_v9 }
 0x157   :  { %v1798_v15 = vadd.f32 %v1670_v42, %v1398_v4  ;;  %v984_v60 = vadd.f32 %v856_v29, %v584_v39  ;;  %v1656_v23 = vmul.f32 %v3962_v49, %v5087_v16  ;;  %v1672_v54 = vmul.f32 %v3962_v49, %v5125_v48 }
 0x158   :  { %2241 = vmatpush1.bf16.msra.mxu1 %v1991_v36  ;;  %v1910_v12 = vmax.f32 %v1782_v56, 0.0  ;;  %v1000_v18 = vadd.f32 %v872_v38, %v600_v25  ;;  %v453_v40 = vmul.f32 %v3965_v13, %v5075_v32  ;;  %v469_v10 = vmul.f32 %v3965_v13, %v5077_v27 }
 0x159   :  { %v1926_v52 = vmax.f32 %v1798_v15, 0.0  ;;  %v1384_v8 = vadd.f32 %v1256_v63, %v984_v60  ;;  %v853_v42 = vmul.f32 %v3970_v7, %v5078_v45  ;;  %v869_v58 = vmul.f32 %v3970_v7, %v5080_v2 }
 0x15a   :  { %v1400_v29 = vadd.f32 %v1272_v6, %v1000_v18  ;;  %v581_v4 = vadd.f32 %v453_v40, %v5082_v59  ;;  %v597_v39 = vadd.f32 %v469_v10, %v5083_v47  ;;  %v1253_v38 = vmul.f32 %v3990_v41, %v5084_v34 }
 0x15b   :  { %v2006_v33 = vpack.c.bf16 %v1926_v52, %v1910_v12  ;;  %v1784_v36 = vadd.f32 %v1656_v23, %v1384_v8  ;;  %v1269_v56 = vmul.f32 %v3990_v41, %v5086_v9  ;;  %v1653_v63 = vmul.f32 %v3993_v26, %v5087_v16 }
 0x15c   :  { %v1800_v25 = vadd.f32 %v1672_v54, %v1400_v29  ;;  %v981_v15 = vadd.f32 %v853_v42, %v581_v4  ;;  %v997_v60 = vadd.f32 %v869_v58, %v597_v39  ;;  %v1669_v6 = vmul.f32 %v3993_v26, %v5125_v48 }
 0x15d   :  { %2201 = vmatprep.subr.bf16.mxu0 %v2006_v33  ;;  %v1912_v18 = vmax.f32 %v1784_v36, 0.0  ;;  %v455_v40 = vmul.f32 %v4010_v43, %v5075_v32  ;;  %v471_v23 = vmul.f32 %v4010_v43, %v5077_v27  ;;  %v855_v12 = vmul.f32 %v4013_v1, %v5078_v45 }
 0x15e   :  { %v1928_v10 = vmax.f32 %v1800_v25, 0.0  ;;  %v1381_v52 = vadd.f32 %v1253_v38, %v981_v15  ;;  %v1397_v8 = vadd.f32 %v1269_v56, %v997_v60  ;;  %v871_v54 = vmul.f32 %v4013_v1, %v5080_v2  ;;  %v5132_v2 = vld [vmem:[#allocation60_spill] sm:$0xff] }
 0x15f   :  { %v583_v42 = vadd.f32 %v455_v40, %v5082_v59  ;;  %v599_v58 = vadd.f32 %v471_v23, %v5083_v47  ;;  %v1255_v29 = vmul.f32 %v4030_v61, %v5084_v34  ;;  %v1271_v4 = vmul.f32 %v4030_v61, %v5086_v9 }
 0x160   :  { %v2008_v39 = vpack.c.bf16 %v1928_v10, %v1912_v18  ;;  %v1781_v33 = vadd.f32 %v1653_v63, %v1381_v52  ;;  %v1797_v36 = vadd.f32 %v1669_v6, %v1397_v8  ;;  %v1655_v38 = vmul.f32 %v4033_v19, %v5087_v16  ;;  %v5126_v18 = vld [vmem:[#allocation19_spill] sm:$0xff]  ;;  %v5128_v8 = vld [vmem:[#allocation54_spill] sm:$0xff] }
 0x161   :  { %v983_v56 = vadd.f32 %v855_v12, %v583_v42  ;;  %v999_v25 = vadd.f32 %v871_v54, %v599_v58  ;;  %v1671_v15 = vmul.f32 %v4033_v19, %v5125_v48  ;;  %v486_v60 = vmul.f32 %v5100_v57, %v5093_v0  ;;  %v5127_v52 = vld [vmem:[#allocation59_spill] sm:$0xff]  ;;  %v5129_v58 = vld [vmem:[#allocation34_spill] sm:$0xff] }
 0x162   :  { %2242 = vmatprep.subr.bf16.mxu1 %v2008_v39  ;;  %v1909_v40 = vmax.f32 %v1781_v33, 0.0  ;;  %v1925_v23 = vmax.f32 %v1797_v36, 0.0  ;;  %v502_v9 = vmul.f32 %v5100_v57, %v5094_v62  ;;  %v886_v63 = vmul.f32 %v5122_v44, %v5126_v18  ;;  %v5130_v16 = vld [vmem:[#allocation99_spill] sm:$0xff]  ;;  %v5131_v33 = vld [vmem:[#allocation45_spill] sm:$0xff] }
 0x163   :  { %v1383_v6 = vadd.f32 %v1255_v29, %v983_v56  ;;  %v1399_v10 = vadd.f32 %v1271_v4, %v999_v25  ;;  %v614_v12 = vadd.f32 %v486_v60, %v5127_v52  ;;  %v902_v54 = vmul.f32 %v5122_v44, %v5128_v8  ;;  %v5133_v56 = vld [vmem:[#allocation88_spill] sm:$0xff] }
 0x164   :  { %v2005_v42 = vpack.c.bf16 %v1925_v23, %v1909_v40  ;;  %v630_v48 = vadd.f32 %v502_v9, %v5129_v58  ;;  %v1286_v39 = vmul.f32 %v3909_v22, %v5130_v16  ;;  %v1302_v36 = vmul.f32 %v3909_v22, %v5131_v33 }
 0x165   :  { %v1783_v57 = vadd.f32 %v1655_v38, %v1383_v6  ;;  %v1799_v34 = vadd.f32 %v1671_v15, %v1399_v10  ;;  %v1014_v47 = vadd.f32 %v886_v63, %v614_v12  ;;  %v1686_v29 = vmul.f32 %v3915_v11, %v5132_v2 }
 0x166   :  { %2202 = vmatpush1.bf16.msra.mxu0 %v2005_v42  ;;  %v1030_v4 = vadd.f32 %v902_v54, %v630_v48  ;;  %v1702_v44 = vmul.f32 %v3915_v11, %v5133_v56  ;;  %v488_v9 = vmul.f32 %v3924_v21, %v5093_v0  ;;  %v504_v25 = vmul.f32 %v3924_v21, %v5094_v62 }
 0x167   :  { %v1911_v60 = vmax.f32 %v1783_v57, 0.0  ;;  %v1927_v40 = vmax.f32 %v1799_v34, 0.0  ;;  %v1414_v22 = vadd.f32 %v1286_v39, %v1014_v47  ;;  %v888_v38 = vmul.f32 %v3931_v51, %v5126_v18 }
 0x168   :  { %v1430_v15 = vadd.f32 %v1302_v36, %v1030_v4  ;;  %v616_v23 = vadd.f32 %v488_v9, %v5127_v52  ;;  %v632_v48 = vadd.f32 %v504_v25, %v5129_v58  ;;  %v904_v11 = vmul.f32 %v3931_v51, %v5128_v8 }
 0x169   :  { %v2007_v63 = vpack.c.bf16 %v1927_v40, %v1911_v60  ;;  %v1814_v6 = vadd.f32 %v1686_v29, %v1414_v22  ;;  %v1288_v10 = vmul.f32 %v3949_v3, %v5130_v16  ;;  %v1304_v34 = vmul.f32 %v3949_v3, %v5131_v33 }
 0x16a   :  { %v1830_v47 = vadd.f32 %v1702_v44, %v1430_v15  ;;  %v1016_v21 = vadd.f32 %v888_v38, %v616_v23  ;;  %v1032_v12 = vadd.f32 %v904_v11, %v632_v48  ;;  %v1688_v54 = vmul.f32 %v3962_v49, %v5132_v2 }
 0x16b   :  { %2243 = vmatpush1.bf16.msra.mxu1 %v2007_v63  ;;  %v1942_v42 = vmax.f32 %v1814_v6, 0.0  ;;  %v1704_v39 = vmul.f32 %v3962_v49, %v5133_v56  ;;  %v485_v51 = vmul.f32 %v3965_v13, %v5093_v0  ;;  %v501_v36 = vmul.f32 %v3965_v13, %v5094_v62 }
 0x16c   :  { %v1958_v57 = vmax.f32 %v1830_v47, 0.0  ;;  %v1416_v29 = vadd.f32 %v1288_v10, %v1016_v21  ;;  %v1432_v3 = vadd.f32 %v1304_v34, %v1032_v12  ;;  %v885_v4 = vmul.f32 %v3970_v7, %v5126_v18 }
 0x16d   :  { %v613_v44 = vadd.f32 %v485_v51, %v5127_v52  ;;  %v629_v9 = vadd.f32 %v501_v36, %v5129_v58  ;;  %v901_v25 = vmul.f32 %v3970_v7, %v5128_v8  ;;  %v1285_v49 = vmul.f32 %v3990_v41, %v5130_v16 }
 0x16e   :  { %v2022_v60 = vpack.c.bf16 %v1958_v57, %v1942_v42  ;;  %v1816_v40 = vadd.f32 %v1688_v54, %v1416_v29  ;;  %v1832_v22 = vadd.f32 %v1704_v39, %v1432_v3  ;;  %v1301_v13 = vmul.f32 %v3990_v41, %v5131_v33  ;;  %v5134_v3 = vld [vmem:[#allocation8_spill] sm:$0xff] }
 0x16f   :  { %v1013_v38 = vadd.f32 %v885_v4, %v613_v44  ;;  %v1029_v15 = vadd.f32 %v901_v25, %v629_v9  ;;  %v1685_v23 = vmul.f32 %v3993_v26, %v5132_v2  ;;  %v1701_v48 = vmul.f32 %v3993_v26, %v5133_v56  ;;  %v5135_v25 = vld [vmem:[#allocation6_spill] sm:$0xff] }
 0x170   :  { %2203 = vmatprep.subr.bf16.mxu0 %v2022_v60  ;;  %v1944_v11 = vmax.f32 %v1816_v40, 0.0  ;;  %v1960_v7 = vmax.f32 %v1832_v22, 0.0  ;;  %v487_v63 = vmul.f32 %v4010_v43, %v5093_v0  ;;  %v503_v6 = vmul.f32 %v4010_v43, %v5094_v62  ;;  %v4259_v43 = vld [vmem:[%s4678_s0 + $0x30] sm:$0xff]  ;;  %v5136_v60 = vld [vmem:[#allocation10_spill] sm:$0xff] }
 0x171   :  { %v1413_v10 = vadd.f32 %v1285_v49, %v1013_v38  ;;  %v1429_v34 = vadd.f32 %v1301_v13, %v1029_v15  ;;  %v887_v41 = vmul.f32 %v4013_v1, %v5126_v18  ;;  %v903_v47 = vmul.f32 %v4013_v1, %v5128_v8  ;;  %v5137_v38 = vld [vmem:[#allocation12_spill] sm:$0xff] }
 0x172   :  { %v2024_v21 = vpack.c.bf16 %v1960_v7, %v1944_v11  ;;  %v615_v26 = vadd.f32 %v487_v63, %v5127_v52  ;;  %v631_v12 = vadd.f32 %v503_v6, %v5129_v58  ;;  %v1287_v54 = vmul.f32 %v4030_v61, %v5130_v16 }
 0x173   :  { %v1813_v42 = vadd.f32 %v1685_v23, %v1413_v10  ;;  %v1829_v39 = vadd.f32 %v1701_v48, %v1429_v34  ;;  %v1303_v51 = vmul.f32 %v4030_v61, %v5131_v33  ;;  %v1687_v1 = vmul.f32 %v4033_v19, %v5132_v2  ;;  %v5138_v10 = vld [vmem:[#allocation67_spill] sm:$0xff] }
 0x174   :  { %2244 = vmatprep.subr.bf16.mxu1 %v2024_v21  ;;  %v1015_v36 = vadd.f32 %v887_v41, %v615_v26  ;;  %v1031_v57 = vadd.f32 %v903_v47, %v631_v12  ;;  %v1703_v29 = vmul.f32 %v4033_v19, %v5133_v56  ;;  %v292_v4 = vrot.slane %v4259_v43, %v5134_v3  ;;  %v4281_v19 = vld [vmem:[%s4678_s0 + $0x38] sm:$0xff]  ;;  %v5139_v41 = vld [vmem:[#allocation74_spill] sm:$0xff] }
 0x175   :  { %v1941_v44 = vmax.f32 %v1813_v42, 0.0  ;;  %v1957_v9 = vmax.f32 %v1829_v39, 0.0  ;;  %v692_v49 = vrot.slane %v4259_v43, %v5135_v25  ;;  %v1092_v61 = vrot.slane %v4259_v43, %v5136_v60  ;;  %v5140_v21 = vld [vmem:[#allocation26_spill] sm:$0xff]  ;;  %v5141_v42 = vld [vmem:[#allocation75_spill] sm:$0xff] }
 0x176   :  { %v1415_v40 = vadd.f32 %v1287_v54, %v1015_v36  ;;  %v1431_v22 = vadd.f32 %v1303_v51, %v1031_v57  ;;  %v4274_v13 = vrot.slane %v292_v4, %v5114_v20  ;;  %v1492_v15 = vrot.slane %v4259_v43, %v5137_v38  ;;  %v5142_v36 = vld [vmem:[#allocation83_spill] sm:$0xff]  ;;  %v5144_v4 = vld [vmem:[#allocation13_spill] sm:$0xff] }
 0x177   :  { %v2021_v23 = vpack.c.bf16 %v1957_v9, %v1941_v44  ;;  %v4284_v48 = vrot.slane %v692_v49, %v5117_v14  ;;  %v4287_v11 = vrot.slane %v1092_v61, %v5107_v24  ;;  %v300_v7 = vrot.slane %v4281_v19, %v5134_v3 }
 0x178   :  { %v1815_v63 = vadd.f32 %v1687_v1, %v1415_v40  ;;  %v1831_v6 = vadd.f32 %v1703_v29, %v1431_v22  ;;  %v394_v34 = vmul.f32 %v4274_v13, %v5138_v10  ;;  %v410_v47 = vmul.f32 %v4274_v13, %v5139_v41  ;;  %v5143_v29 = vld [vmem:[#allocation53_spill] sm:$0xff] }
 0x179   :  { %2204 = vmatpush1.bf16.msra.mxu0 %v2021_v23  ;;  %v794_v26 = vmul.f32 %v4284_v48, %v5140_v21  ;;  %v810_v12 = vmul.f32 %v4284_v48, %v5120_v28  ;;  %v1194_v54 = vmul.f32 %v4287_v11, %v5112_v53  ;;  %v1210_v39 = vmul.f32 %v4287_v11, %v5141_v42 }
 0x17a   :  { %v1943_v51 = vmax.f32 %v1815_v63, 0.0  ;;  %v1959_v1 = vmax.f32 %v1831_v6, 0.0  ;;  %v522_v57 = vadd.f32 %v394_v34, %v5142_v36  ;;  %v538_v3 = vadd.f32 %v410_v47, %v5143_v29  ;;  %v5147_v6 = vld [vmem:[#allocation89_spill] sm:$0xff] }
 0x17b   :  { %v4306_v44 = vrot.slane %v1492_v15, %v5144_v4  ;;  %v4309_v9 = vrot.slane %v300_v7, %v5114_v20  ;;  %v700_v49 = vrot.slane %v4281_v19, %v5135_v25  ;;  %v1100_v61 = vrot.slane %v4281_v19, %v5136_v60  ;;  %v4320_v15 = vld [vmem:[%s4681_s3] sm:$0x1]  ;;  %v5146_v7 = vld [vmem:[#allocation86_spill] sm:$0xff]  ;;  %s2533_s3 = smov [#allocation2]  }
 0x17c   :  { %v2023_v40 = vpack.c.bf16 %v1959_v1, %v1943_v51  ;;  %v922_v22 = vadd.f32 %v794_v26, %v522_v57  ;;  %v938_v23 = vadd.f32 %v810_v12, %v538_v3  ;;  %v1500_v63 = vrot.slane %v4281_v19, %v5137_v38  ;;  %5145 = vst [vmem:[#allocation92_spill] sm:$0xff] %v4320_v15  ;;  %s2459_s20 = sshll.u32 %s2533_s3, 4  ;;  %s2460_s20 = int_to_ptr.vmem [resolvable:$true] %s2459_s20 }
 0x17d   :  { %2471 = vmatmul.mubr.msk.bf16.vlgmr.msra.gmra.mrb[8].mxu0 %vm2029_vm0, %v4320_v15  ;;  %v1594_v25 = vmul.f32 %v4306_v44, %v5146_v7  ;;  %v1610_v60 = vmul.f32 %v4306_v44, %v5147_v6  ;;  %v396_v34 = vmul.f32 %v4309_v9, %v5138_v10  ;;  %v412_v38 = vmul.f32 %v4309_v9, %v5139_v41  ;;  %s2504_s21 = scalar_lea.vmem %s2460_s20, 512  ;;  %p2509_p1 = scmp.lt.s32.totalorder %s2460_s20, %s2460_s20 }
 0x17e   :  { %v5148_v47 = vmov 0   ;;  %2245 = vmatpush1.bf16.msra.mxu1 %v2023_v40  ;;  %v1322_v26 = vadd.f32 %v1194_v54, %v922_v22  ;;  %v1338_v12 = vadd.f32 %v1210_v39, %v938_v23  ;;  %v4334_v51 = vrot.slane %v700_v49, %v5117_v14  ;;  %p2505_p0 = scmp.ne.s32.totalorder %s2460_s20, %s2504_s21  ;;  %p2510_p2 = scmp.lt.s32.totalorder %s2504_s21, %s2504_s21 }
 0x17f   :  { %2311 = vmatprep.mubr.bf16.mxu0 %v5148_v47  ;;  %v4337_v1 = vrot.slane %v1100_v61, %v5107_v24  ;;  %v524_v57 = vadd.f32 %v396_v34, %v5142_v36  ;;  %v540_v3 = vadd.f32 %v412_v38, %v5143_v29  ;;  %v4342_v56 = vrot.slane %v1500_v63, %v5144_v4 }
 0x180   :  { %v288_v2 = vrot.slane %v4259_v43, %v5114_v20  ;;  %v1722_v33 = vadd.f32 %v1594_v25, %v1322_v26  ;;  %v1738_v40 = vadd.f32 %v1610_v60, %v1338_v12  ;;  %v796_v54 = vmul.f32 %v4334_v51, %v5140_v21  ;;  %p2511_p3 = por %p2510_p2, %p2509_p1 }
 0x181   :  { %v812_v39 = vmul.f32 %v4334_v51, %v5120_v28  ;;  %v1196_v49 = vmul.f32 %v4337_v1, %v5112_v53  ;;  %v1212_v61 = vmul.f32 %v4337_v1, %v5141_v42  ;;  %v1596_v22 = vmul.f32 %v4342_v56, %v5146_v7  ;;  %2472 = vmatmul.mubr.msk.bf16.vlgmr.msra.gmra.mrb[8].mxu1 %vm2029_vm0, %v4320_v15 }
 0x182   :  { %v1612_v23 = vmul.f32 %v4342_v56, %v5147_v6  ;;  %v1850_v63 = vmax.f32 %v1722_v33, 0.0  ;;  %v1866_v25 = vmax.f32 %v1738_v40, 0.0  ;;  %v924_v60 = vadd.f32 %v796_v54, %v524_v57  ;;  %2352 = vmatprep.mubr.bf16.mxu1 %v5148_v47  ;;  %p2512_p4 = pnand %p2511_p3, %p2505_p0 }
 0x183   :  { %v940_v34 = vadd.f32 %v812_v39, %v540_v3  ;;  %v4362_v38 = vrot.slane %v288_v2, %v5114_v20  ;;  %v688_v26 = vrot.slane %v4259_v43, %v5117_v14  ;;  %v1088_v12 = vrot.slane %v4259_v43, %v5107_v24 }
 0x184   :  { %v1488_v16 = vrot.slane %v4259_v43, %v5144_v4  ;;  %v1978_v58 = vpack.c.bf16 %v1866_v25, %v1850_v63  ;;  %v1324_v15 = vadd.f32 %v1196_v49, %v924_v60  ;;  %v296_v57 = vrot.slane %v4281_v19, %v5114_v20 }
 0x185   :  { %v1340_v33 = vadd.f32 %v1212_v61, %v940_v34  ;;  %v393_v47 = vmul.f32 %v4362_v38, %v5138_v10  ;;  %v409_v2 = vmul.f32 %v4362_v38, %v5139_v41  ;;  %v4377_v3 = vrot.slane %v688_v26, %v5117_v14 }
 0x186   :  { %v4380_v40 = vrot.slane %v1088_v12, %v5107_v24  ;;  %2279 = vmatprep.subr.bf16.mxu0 %v1978_v58  ;;  %v1724_v43 = vadd.f32 %v1596_v22, %v1324_v15  ;;  %v4383_v39 = vrot.slane %v1488_v16, %v5144_v4  ;;  %v4386_v49 = vrot.slane %v296_v57, %v5114_v20 }
 0x187   :  { %v1740_v54 = vadd.f32 %v1612_v23, %v1340_v33  ;;  %v521_v61 = vadd.f32 %v393_v47, %v5142_v36  ;;  %v537_v63 = vadd.f32 %v409_v2, %v5143_v29  ;;  %v793_v25 = vmul.f32 %v4377_v3, %v5140_v21 }
 0x188   :  { %v809_v60 = vmul.f32 %v4377_v3, %v5120_v28  ;;  %v1852_v34 = vmax.f32 %v1724_v43, 0.0  ;;  %v1193_v15 = vmul.f32 %v4380_v40, %v5112_v53  ;;  %v1209_v16 = vmul.f32 %v4380_v40, %v5141_v42 }
 0x189   :  { %v1868_v58 = vmax.f32 %v1740_v54, 0.0  ;;  %v921_v20 = vadd.f32 %v793_v25, %v521_v61  ;;  %v1593_v23 = vmul.f32 %v4383_v39, %v5146_v7  ;;  %v1609_v26 = vmul.f32 %v4383_v39, %v5147_v6 }
 0x18a   :  { %v937_v22 = vadd.f32 %v809_v60, %v537_v63  ;;  %v395_v33 = vmul.f32 %v4386_v49, %v5138_v10  ;;  %v411_v57 = vmul.f32 %v4386_v49, %v5139_v41  ;;  %v696_v47 = vrot.slane %v4281_v19, %v5117_v14 }
 0x18b   :  { %v1980_v12 = vpack.c.bf16 %v1868_v58, %v1852_v34  ;;  %v1321_v2 = vadd.f32 %v1193_v15, %v921_v20  ;;  %v1096_v54 = vrot.slane %v4281_v19, %v5107_v24  ;;  %v1496_v61 = vrot.slane %v4281_v19, %v5144_v4 }
 0x18c   :  { %v1337_v43 = vadd.f32 %v1209_v16, %v937_v22  ;;  %v523_v63 = vadd.f32 %v395_v33, %v5142_v36  ;;  %v539_v25 = vadd.f32 %v411_v57, %v5143_v29  ;;  %v4415_v10 = vrot.slane %v696_v47, %v5117_v14 }
 0x18d   :  { %2320 = vmatprep.subr.bf16.mxu1 %v1980_v12  ;;  %v426_v41 = vmul.f32 %v4274_v13, %v5031_v46  ;;  %v1721_v60 = vadd.f32 %v1593_v23, %v1321_v2  ;;  %v4420_v58 = vrot.slane %v1096_v54, %v5107_v24  ;;  %v4423_v15 = vrot.slane %v1496_v61, %v5144_v4  ;;  %v5149_v54 = vld [vmem:[#allocation22_spill] sm:$0xff] }
 0x18e   :  { %v1737_v34 = vadd.f32 %v1609_v26, %v1337_v43  ;;  %v795_v19 = vmul.f32 %v4415_v10, %v5140_v21  ;;  %v811_v36 = vmul.f32 %v4415_v10, %v5120_v28  ;;  %v442_v14 = vmul.f32 %v4274_v13, %v5121_v55 }
 0x18f   :  { %v554_v29 = vadd.f32 %v426_v41, %v5036_v35  ;;  %v1849_v16 = vmax.f32 %v1721_v60, 0.0  ;;  %v1195_v24 = vmul.f32 %v4420_v58, %v5112_v53  ;;  %v1211_v4 = vmul.f32 %v4420_v58, %v5141_v42 }
 0x190   :  { %v1865_v20 = vmax.f32 %v1737_v34, 0.0  ;;  %v923_v22 = vadd.f32 %v795_v19, %v523_v63  ;;  %v939_v23 = vadd.f32 %v811_v36, %v539_v25  ;;  %v1595_v21 = vmul.f32 %v4423_v15, %v5146_v7 }
 0x191   :  { %v1611_v28 = vmul.f32 %v4423_v15, %v5147_v6  ;;  %v570_v12 = vadd.f32 %v442_v14, %v5037_v50  ;;  %v826_v33 = vmul.f32 %v4284_v48, %v5039_v31  ;;  %v842_v53 = vmul.f32 %v4284_v48, %v5123_v17 }
 0x192   :  { %v1977_v26 = vpack.c.bf16 %v1865_v20, %v1849_v16  ;;  %v1323_v57 = vadd.f32 %v1195_v24, %v923_v22  ;;  %v1339_v47 = vadd.f32 %v1211_v4, %v939_v23  ;;  %v1226_v42 = vmul.f32 %v4287_v11, %v5041_v5 }
 0x193   :  { %v1242_v7 = vmul.f32 %v4287_v11, %v3348_v37  ;;  %v954_v2 = vadd.f32 %v826_v33, %v554_v29  ;;  %v970_v6 = vadd.f32 %v842_v53, %v570_v12  ;;  %v1626_v43 = vmul.f32 %v4306_v44, %v5124_v30 }
 0x194   :  { %2280 = vmatpush1.bf16.msra.mxu0 %v1977_v26  ;;  %v1642_v61 = vmul.f32 %v4306_v44, %v5149_v54  ;;  %v1723_v63 = vadd.f32 %v1595_v21, %v1323_v57  ;;  %v1739_v25 = vadd.f32 %v1611_v28, %v1339_v47  ;;  %v428_v41 = vmul.f32 %v4309_v9, %v5031_v46 }
 0x195   :  { %v444_v60 = vmul.f32 %v4309_v9, %v5121_v55  ;;  %v1354_v34 = vadd.f32 %v1226_v42, %v954_v2  ;;  %v1370_v19 = vadd.f32 %v1242_v7, %v970_v6  ;;  %v828_v36 = vmul.f32 %v4334_v51, %v5039_v31 }
 0x196   :  { %v844_v14 = vmul.f32 %v4334_v51, %v5123_v17  ;;  %v1851_v29 = vmax.f32 %v1723_v63, 0.0  ;;  %v1867_v16 = vmax.f32 %v1739_v25, 0.0  ;;  %v556_v20 = vadd.f32 %v428_v41, %v5036_v35 }
 0x197   :  { %v572_v24 = vadd.f32 %v444_v60, %v5037_v50  ;;  %v1754_v4 = vadd.f32 %v1626_v43, %v1354_v34  ;;  %v1770_v22 = vadd.f32 %v1642_v61, %v1370_v19  ;;  %v1228_v23 = vmul.f32 %v4337_v1, %v5041_v5 }
 0x198   :  { %v1244_v21 = vmul.f32 %v4337_v1, %v3348_v37  ;;  %v1979_v28 = vpack.c.bf16 %v1867_v16, %v1851_v29  ;;  %v956_v26 = vadd.f32 %v828_v36, %v556_v20  ;;  %v1628_v33 = vmul.f32 %v4342_v56, %v5124_v30 }
 0x199   :  { %v972_v12 = vadd.f32 %v844_v14, %v572_v24  ;;  %v1882_v53 = vmax.f32 %v1754_v4, 0.0  ;;  %v1898_v57 = vmax.f32 %v1770_v22, 0.0  ;;  %v1644_v47 = vmul.f32 %v4342_v56, %v5149_v54 }
 0x19a   :  { %v425_v42 = vmul.f32 %v4362_v38, %v5031_v46  ;;  %2321 = vmatpush1.bf16.msra.mxu1 %v1979_v28  ;;  %v1356_v7 = vadd.f32 %v1228_v23, %v956_v26  ;;  %v441_v6 = vmul.f32 %v4362_v38, %v5121_v55  ;;  %v825_v43 = vmul.f32 %v4377_v3, %v5039_v31 }
 0x19b   :  { %v1372_v2 = vadd.f32 %v1244_v21, %v972_v12  ;;  %v1994_v61 = vpack.c.bf16 %v1898_v57, %v1882_v53  ;;  %v841_v25 = vmul.f32 %v4377_v3, %v5123_v17  ;;  %v1225_v41 = vmul.f32 %v4380_v40, %v5041_v5 }
 0x19c   :  { %v553_v63 = vadd.f32 %v425_v42, %v5036_v35  ;;  %v1756_v60 = vadd.f32 %v1628_v33, %v1356_v7  ;;  %v569_v19 = vadd.f32 %v441_v6, %v5037_v50  ;;  %v1241_v36 = vmul.f32 %v4380_v40, %v3348_v37 }
 0x19d   :  { %v1772_v34 = vadd.f32 %v1644_v47, %v1372_v2  ;;  %2281 = vmatprep.subr.bf16.mxu0 %v1994_v61  ;;  %v1625_v29 = vmul.f32 %v4383_v39, %v5124_v30  ;;  %v1641_v16 = vmul.f32 %v4383_v39, %v5149_v54  ;;  %v427_v20 = vmul.f32 %v4386_v49, %v5031_v46 }
 0x19e   :  { %v953_v14 = vadd.f32 %v825_v43, %v553_v63  ;;  %v1884_v24 = vmax.f32 %v1756_v60, 0.0  ;;  %v969_v22 = vadd.f32 %v841_v25, %v569_v19  ;;  %v443_v23 = vmul.f32 %v4386_v49, %v5121_v55  ;;  %v5150_v63 = vld [vmem:[#allocation18_spill] sm:$0xff] }
 0x19f   :  { %v1900_v4 = vmax.f32 %v1772_v34, 0.0  ;;  %v555_v28 = vadd.f32 %v427_v20, %v5036_v35  ;;  %v827_v26 = vmul.f32 %v4415_v10, %v5039_v31  ;;  %v843_v12 = vmul.f32 %v4415_v10, %v5123_v17  ;;  %v5152_v34 = vld [vmem:[#allocation21_spill] sm:$0xff] }
 0x1a0   :  { %v1353_v21 = vadd.f32 %v1225_v41, %v953_v14  ;;  %v1369_v53 = vadd.f32 %v1241_v36, %v969_v22  ;;  %v571_v57 = vadd.f32 %v443_v23, %v5037_v50  ;;  %v1227_v46 = vmul.f32 %v4420_v58, %v5041_v5  ;;  %v5153_v36 = vld [vmem:[#allocation30_spill] sm:$0xff] }
 0x1a1   :  { %v1996_v33 = vpack.c.bf16 %v1900_v4, %v1884_v24  ;;  %v955_v42 = vadd.f32 %v827_v26, %v555_v28  ;;  %v1243_v55 = vmul.f32 %v4420_v58, %v3348_v37  ;;  %v1627_v35 = vmul.f32 %v4423_v15, %v5124_v30  ;;  %v5154_v24 = vld [vmem:[#allocation20_spill] sm:$0xff] }
 0x1a2   :  { %v1753_v47 = vadd.f32 %v1625_v29, %v1353_v21  ;;  %v1769_v31 = vadd.f32 %v1641_v16, %v1369_v53  ;;  %v971_v7 = vadd.f32 %v843_v12, %v571_v57  ;;  %v1643_v17 = vmul.f32 %v4423_v15, %v5149_v54  ;;  %v5151_v54 = vld [vmem:[#allocation94_spill] sm:$0xff] }
 0x1a3   :  { %2322 = vmatprep.subr.bf16.mxu1 %v1996_v33  ;;  %v458_v50 = vmul.f32 %v4274_v13, %v5075_v32  ;;  %v1355_v6 = vadd.f32 %v1227_v46, %v955_v42  ;;  %v474_v5 = vmul.f32 %v4274_v13, %v5077_v27  ;;  %v858_v37 = vmul.f32 %v4284_v48, %v5078_v45  ;;  %v5155_v21 = vld [vmem:[#allocation90_spill] sm:$0xff] }
 0x1a4   :  { %v1881_v2 = vmax.f32 %v1753_v47, 0.0  ;;  %v1897_v43 = vmax.f32 %v1769_v31, 0.0  ;;  %v1371_v61 = vadd.f32 %v1243_v55, %v971_v7  ;;  %v874_v25 = vmul.f32 %v4284_v48, %v5150_v63 }
 0x1a5   :  { %v586_v30 = vadd.f32 %v458_v50, %v5082_v59  ;;  %v1755_v41 = vadd.f32 %v1627_v35, %v1355_v6  ;;  %v602_v60 = vadd.f32 %v474_v5, %v5151_v54  ;;  %v1258_v19 = vmul.f32 %v4287_v11, %v5152_v34 }
 0x1a6   :  { %v1274_v14 = vmul.f32 %v4287_v11, %v5153_v36  ;;  %v1993_v29 = vpack.c.bf16 %v1897_v43, %v1881_v2  ;;  %v1771_v16 = vadd.f32 %v1643_v17, %v1371_v61  ;;  %v1658_v4 = vmul.f32 %v4306_v44, %v5154_v24 }
 0x1a7   :  { %v986_v20 = vadd.f32 %v858_v37, %v586_v30  ;;  %v1883_v22 = vmax.f32 %v1755_v41, 0.0  ;;  %v1002_v23 = vadd.f32 %v874_v25, %v602_v60  ;;  %v1674_v28 = vmul.f32 %v4306_v44, %v5155_v21 }
 0x1a8   :  { %v460_v26 = vmul.f32 %v4309_v9, %v5075_v32  ;;  %2282 = vmatpush1.bf16.msra.mxu0 %v1993_v29  ;;  %v1899_v12 = vmax.f32 %v1771_v16, 0.0  ;;  %v476_v53 = vmul.f32 %v4309_v9, %v5077_v27  ;;  %v860_v57 = vmul.f32 %v4334_v51, %v5078_v45 }
 0x1a9   :  { %v1386_v33 = vadd.f32 %v1258_v19, %v986_v20  ;;  %v1402_v46 = vadd.f32 %v1274_v14, %v1002_v23  ;;  %v876_v42 = vmul.f32 %v4334_v51, %v5150_v63  ;;  %v1260_v55 = vmul.f32 %v4337_v1, %v5152_v34 }
 0x1aa   :  { %v588_v47 = vadd.f32 %v460_v26, %v5082_v59  ;;  %v1995_v35 = vpack.c.bf16 %v1899_v12, %v1883_v22  ;;  %v604_v7 = vadd.f32 %v476_v53, %v5151_v54  ;;  %v1276_v17 = vmul.f32 %v4337_v1, %v5153_v36 }
 0x1ab   :  { %v1786_v31 = vadd.f32 %v1658_v4, %v1386_v33  ;;  %v1802_v50 = vadd.f32 %v1674_v28, %v1402_v46  ;;  %v1660_v6 = vmul.f32 %v4342_v56, %v5154_v24  ;;  %v1676_v5 = vmul.f32 %v4342_v56, %v5155_v21 }
 0x1ac   :  { %v988_v2 = vadd.f32 %v860_v57, %v588_v47  ;;  %2323 = vmatpush1.bf16.msra.mxu1 %v1995_v35  ;;  %v1004_v43 = vadd.f32 %v876_v42, %v604_v7  ;;  %v457_v61 = vmul.f32 %v4362_v38, %v5075_v32  ;;  %v473_v30 = vmul.f32 %v4362_v38, %v5077_v27 }
 0x1ad   :  { %v1914_v37 = vmax.f32 %v1786_v31, 0.0  ;;  %v1930_v25 = vmax.f32 %v1802_v50, 0.0  ;;  %v857_v60 = vmul.f32 %v4377_v3, %v5078_v45  ;;  %v873_v19 = vmul.f32 %v4377_v3, %v5150_v63 }
 0x1ae   :  { %v1388_v41 = vadd.f32 %v1260_v55, %v988_v2  ;;  %v1404_v14 = vadd.f32 %v1276_v17, %v1004_v43  ;;  %v585_v29 = vadd.f32 %v457_v61, %v5082_v59  ;;  %v601_v16 = vadd.f32 %v473_v30, %v5151_v54 }
 0x1af   :  { %v1257_v20 = vmul.f32 %v4380_v40, %v5152_v34  ;;  %v2010_v4 = vpack.c.bf16 %v1930_v25, %v1914_v37  ;;  %v1273_v23 = vmul.f32 %v4380_v40, %v5153_v36  ;;  %v1657_v28 = vmul.f32 %v4383_v39, %v5154_v24 }
 0x1b0   :  { %v1788_v22 = vadd.f32 %v1660_v6, %v1388_v41  ;;  %v1804_v26 = vadd.f32 %v1676_v5, %v1404_v14  ;;  %v985_v12 = vadd.f32 %v857_v60, %v585_v29  ;;  %v1001_v33 = vadd.f32 %v873_v19, %v601_v16  ;;  %v5156_v60 = vld [vmem:[#allocation34_spill] sm:$0xff]  ;;  %v5157_v14 = vld [vmem:[#allocation99_spill] sm:$0xff]  ;;  %v5158_v16 = vld [vmem:[#allocation45_spill] sm:$0xff] }
 0x1b1   :  { %v1673_v53 = vmul.f32 %v4383_v39, %v5155_v21  ;;  %2283 = vmatprep.subr.bf16.mxu0 %v2010_v4  ;;  %v459_v46 = vmul.f32 %v4386_v49, %v5075_v32  ;;  %v475_v47 = vmul.f32 %v4386_v49, %v5077_v27  ;;  %v859_v42 = vmul.f32 %v4415_v10, %v5078_v45 }
 0x1b2   :  { %v1916_v57 = vmax.f32 %v1788_v22, 0.0  ;;  %v1932_v55 = vmax.f32 %v1804_v26, 0.0  ;;  %v1385_v35 = vadd.f32 %v1257_v20, %v985_v12  ;;  %v1401_v31 = vadd.f32 %v1273_v23, %v1001_v33  ;;  %v5159_v23 = vld [vmem:[#allocation60_spill] sm:$0xff] }
 0x1b3   :  { %v875_v7 = vmul.f32 %v4415_v10, %v5150_v63  ;;  %v587_v17 = vadd.f32 %v459_v46, %v5082_v59  ;;  %v603_v50 = vadd.f32 %v475_v47, %v5151_v54  ;;  %v1259_v2 = vmul.f32 %v4420_v58, %v5152_v34  ;;  %v5160_v12 = vld [vmem:[#allocation88_spill] sm:$0xff] }
 0x1b4   :  { %v1275_v32 = vmul.f32 %v4420_v58, %v5153_v36  ;;  %v2012_v27 = vpack.c.bf16 %v1932_v55, %v1916_v57  ;;  %v1785_v6 = vadd.f32 %v1657_v28, %v1385_v35  ;;  %v1801_v5 = vadd.f32 %v1673_v53, %v1401_v31 }
 0x1b5   :  { %v1659_v45 = vmul.f32 %v4423_v15, %v5154_v24  ;;  %v987_v37 = vadd.f32 %v859_v42, %v587_v17  ;;  %v1003_v43 = vadd.f32 %v875_v7, %v603_v50  ;;  %v1675_v63 = vmul.f32 %v4423_v15, %v5155_v21 }
 0x1b6   :  { %v490_v59 = vmul.f32 %v4274_v13, %v5093_v0  ;;  %2324 = vmatprep.subr.bf16.mxu1 %v2012_v27  ;;  %v1913_v54 = vmax.f32 %v1785_v6, 0.0  ;;  %v1929_v34 = vmax.f32 %v1801_v5, 0.0  ;;  %v506_v36 = vmul.f32 %v4274_v13, %v5094_v62 }
 0x1b7   :  { %v890_v61 = vmul.f32 %v4284_v48, %v5126_v18  ;;  %v1387_v30 = vadd.f32 %v1259_v2, %v987_v37  ;;  %v1403_v25 = vadd.f32 %v1275_v32, %v1003_v43  ;;  %v906_v41 = vmul.f32 %v4284_v48, %v5128_v8 }
 0x1b8   :  { %v618_v24 = vadd.f32 %v490_v59, %v5127_v52  ;;  %v2009_v21 = vpack.c.bf16 %v1929_v34, %v1913_v54  ;;  %v634_v19 = vadd.f32 %v506_v36, %v5156_v60  ;;  %v1290_v29 = vmul.f32 %v4287_v11, %v5157_v14 }
 0x1b9   :  { %v1306_v20 = vmul.f32 %v4287_v11, %v5158_v16  ;;  %v1787_v13 = vadd.f32 %v1659_v45, %v1387_v30  ;;  %v1803_v4 = vadd.f32 %v1675_v63, %v1403_v25  ;;  %v1690_v28 = vmul.f32 %v4306_v44, %v5159_v23 }
 0x1ba   :  { %v1018_v22 = vadd.f32 %v890_v61, %v618_v24  ;;  %2284 = vmatpush1.bf16.msra.mxu0 %v2009_v21  ;;  %v1034_v26 = vadd.f32 %v906_v41, %v634_v19  ;;  %v1706_v48 = vmul.f32 %v4306_v44, %v5160_v12  ;;  %v492_v33 = vmul.f32 %v4309_v9, %v5093_v0 }
 0x1bb   :  { %v508_v53 = vmul.f32 %v4309_v9, %v5094_v62  ;;  %v1915_v57 = vmax.f32 %v1787_v13, 0.0  ;;  %v1931_v46 = vmax.f32 %v1803_v4, 0.0  ;;  %v892_v47 = vmul.f32 %v4334_v51, %v5126_v18 }
 0x1bc   :  { %v1418_v11 = vadd.f32 %v1290_v29, %v1018_v22  ;;  %v1434_v42 = vadd.f32 %v1306_v20, %v1034_v26  ;;  %v620_v55 = vadd.f32 %v492_v33, %v5127_v52  ;;  %v908_v44 = vmul.f32 %v4334_v51, %v5128_v8 }
 0x1bd   :  { %v636_v35 = vadd.f32 %v508_v53, %v5156_v60  ;;  %v2011_v31 = vpack.c.bf16 %v1931_v46, %v1915_v57  ;;  %v1292_v17 = vmul.f32 %v4337_v1, %v5157_v14  ;;  %v1308_v9 = vmul.f32 %v4337_v1, %v5158_v16 }
 0x1be   :  { %v1818_v7 = vadd.f32 %v1690_v28, %v1418_v11  ;;  %v1834_v50 = vadd.f32 %v1706_v48, %v1434_v42  ;;  %v1020_v2 = vadd.f32 %v892_v47, %v620_v55  ;;  %v1692_v27 = vmul.f32 %v4342_v56, %v5159_v23 }
 0x1bf   :  { %v1036_v32 = vadd.f32 %v908_v44, %v636_v35  ;;  %2325 = vmatpush1.bf16.msra.mxu1 %v2011_v31  ;;  %v1708_v5 = vmul.f32 %v4342_v56, %v5160_v12  ;;  %v489_v51 = vmul.f32 %v4362_v38, %v5093_v0  ;;  %v505_v45 = vmul.f32 %v4362_v38, %v5094_v62  ;;  %v5161_v35 = vld [vmem:[#allocation92_spill] sm:$0xff] }
 0x1c0   :  { %v1946_v6 = vmax.f32 %v1818_v7, 0.0  ;;  %v1962_v37 = vmax.f32 %v1834_v50, 0.0  ;;  %v1420_v43 = vadd.f32 %v1292_v17, %v1020_v2  ;;  %v889_v63 = vmul.f32 %v4377_v3, %v5126_v18  ;;  %v5162_v17 = vld [vmem:[#allocation5_spill] sm:$0xff] }
 0x1c1   :  { %v1436_v1 = vadd.f32 %v1308_v9, %v1036_v32  ;;  %v617_v59 = vadd.f32 %v489_v51, %v5127_v52  ;;  %v633_v54 = vadd.f32 %v505_v45, %v5156_v60  ;;  %v905_v34 = vmul.f32 %v4377_v3, %v5128_v8 }
 0x1c2   :  { %v1289_v56 = vmul.f32 %v4380_v40, %v5157_v14  ;;  %v2026_v36 = vpack.c.bf16 %v1962_v37, %v1946_v6  ;;  %v1820_v61 = vadd.f32 %v1692_v27, %v1420_v43  ;;  %v1305_v38 = vmul.f32 %v4380_v40, %v5158_v16 }
 0x1c3   :  { %v1836_v30 = vadd.f32 %v1708_v5, %v1436_v1  ;;  %v1017_v25 = vadd.f32 %v889_v63, %v617_v59  ;;  %v1033_v24 = vadd.f32 %v905_v34, %v633_v54  ;;  %v1689_v41 = vmul.f32 %v4383_v39, %v5159_v23 }
 0x1c4   :  { %v1705_v21 = vmul.f32 %v4383_v39, %v5160_v12  ;;  %2285 = vmatprep.subr.bf16.mxu0 %v2026_v36  ;;  %v1948_v19 = vmax.f32 %v1820_v61, 0.0  ;;  %v491_v29 = vmul.f32 %v4386_v49, %v5093_v0  ;;  %v507_v20 = vmul.f32 %v4386_v49, %v5094_v62 }
 0x1c5   :  { %v1964_v3 = vmax.f32 %v1836_v30, 0.0  ;;  %v1417_v13 = vadd.f32 %v1289_v56, %v1017_v25  ;;  %v1433_v4 = vadd.f32 %v1305_v38, %v1033_v24  ;;  %v891_v40 = vmul.f32 %v4415_v10, %v5126_v18 }
 0x1c6   :  { %v907_v22 = vmul.f32 %v4415_v10, %v5128_v8  ;;  %v619_v39 = vadd.f32 %v491_v29, %v5127_v52  ;;  %v635_v26 = vadd.f32 %v507_v20, %v5156_v60  ;;  %v1291_v48 = vmul.f32 %v4420_v58, %v5157_v14 }
 0x1c7   :  { %v2028_v28 = vpack.c.bf16 %v1964_v3, %v1948_v19  ;;  %v1817_v0 = vadd.f32 %v1689_v41, %v1417_v13  ;;  %v1833_v33 = vadd.f32 %v1705_v21, %v1433_v4  ;;  %v1307_v62 = vmul.f32 %v4420_v58, %v5158_v16 }
 0x1c8   :  { %v1019_v49 = vadd.f32 %v891_v40, %v619_v39  ;;  %v1035_v53 = vadd.f32 %v907_v22, %v635_v26  ;;  %v1691_v18 = vmul.f32 %v4423_v15, %v5159_v23  ;;  %v1707_v8 = vmul.f32 %v4423_v15, %v5160_v12 }
 0x1c9   :  { %2326 = vmatprep.subr.bf16.mxu1 %v2028_v28  ;;  %v1945_v52 = vmax.f32 %v1817_v0, 0.0  ;;  %v1961_v10 = vmax.f32 %v1833_v33, 0.0  ;;  %v2532_v47 = vmov 1983009808  }
 0x1ca   :  { %v1419_v60 = vadd.f32 %v1291_v48, %v1019_v49  ;;  %v1435_v57 = vadd.f32 %v1307_v62, %v1035_v53  ;;  %v2380_v42 = vunpack.c.l.s4 %v2532_v47 }
 0x1cb   :  { %v2025_v46 = vpack.c.bf16 %v1961_v10, %v1945_v52 }
 0x1cc   :  { %v1819_v14 = vadd.f32 %v1691_v18, %v1419_v60  ;;  %v1835_v11 = vadd.f32 %v1707_v8, %v1435_v57  ;;  %v2381_v23 = vunpack.c.0.s8 %v2380_v42 }
 0x1cd   :  { %2286 = vmatpush1.bf16.msra.mxu0 %v2025_v46 }
 0x1ce   :  { %v1947_v58 = vmax.f32 %v1819_v14, 0.0  ;;  %v1963_v16 = vmax.f32 %v1835_v11, 0.0  ;;  %v4656_v9 = vsub.s32 %v2381_v23, %v5162_v17 }
 0x1d0   :  { %v2027_v55 = vpack.c.bf16 %v1963_v16, %v1947_v58  ;;  %2473 = vmatmul.mubr.msk.bf16.vlgmr.msra.gmra.mrb[12].mxu0 %vm2029_vm0, %v5161_v35 }
 0x1d2   :  { %2327 = vmatpush1.bf16.msra.mxu1 %v2027_v55  ;;  %v219_v7 = vpop.permute.xlu0 %218 }
 0x1d3   :  { %v2067_v44 = vpop.f32.mrb[0].mxu0  ;;  %v2108_v15 = vpop.f32.mrb[0].mxu1 }
 0x1d4   :  { %v2069_v12 = vpop.f32.mrb[1].mxu0  ;;  %v2110_v31 = vpop.f32.mrb[1].mxu1  ;;  %v2068_v2 = vadd.f32 %v2067_v44, %v219_v7  ;;  %v2109_v27 = vadd.f32 %v2108_v15, %v219_v7 }
 0x1d5   :  { %2474 = vmatmul.mubr.msk.bf16.vlgmr.msra.gmra.mrb[12].mxu1 %vm2029_vm0, %v5161_v35  ;;  %v2071_v50 = vpop.f32.mrb[2].mxu0  ;;  %v2070_v32 = vadd.f32 %v2069_v12, %v219_v7  ;;  %v2111_v6 = vadd.f32 %v2110_v31, %v219_v7  ;;  %v2112_v5 = vpop.f32.mrb[2].mxu1 }
 0x1d6   :  { %v2072_v51 = vpop.f32.mrb[3].mxu0  ;;  %v2113_v45 = vpop.f32.mrb[3].mxu1 }
 0x1d7   :  { %v2377_v37 = vcombine.low %v2068_v2, %v2070_v32  ;;  %v2378_v43 = vcombine.low %v2109_v27, %v2111_v6 }
 0x1d9   :  { %v2385_v1 = vrot.slane %v2377_v37, %v4656_v9  ;;  %v2392_v63 = vrot.slane %v2378_v43, %v4656_v9 }
 0x1db   :  { %v2393_v59 = vcombine.low %v2385_v1, %v2392_v63 }
 0x1dd   :  { %2449 = vst [vmem:[#allocation2] sm:$0xff] %v2393_v59 }
 0x1fd   :  { %v2149_v54 = vpop.f32.mrb[4].mxu0 }
 0x1fe   :  { %v2150_v34 = vadd.f32 %v2149_v54, %v219_v7  ;;  %v2151_v56 = vpop.f32.mrb[5].mxu0 }
 0x1ff   :  { %v2152_v36 = vadd.f32 %v2151_v56, %v219_v7  ;;  %v2153_v61 = vpop.f32.mrb[6].mxu0 }
 0x200   :  { %v2154_v30 = vpop.f32.mrb[7].mxu0 }
 0x201   :  { %v2394_v38 = vcombine.low %v2150_v34, %v2152_v36 }
 0x202   :  { %v2190_v25 = vpop.f32.mrb[4].mxu1 }
 0x203   :  { %v2191_v24 = vadd.f32 %v2190_v25, %v219_v7  ;;  %v2192_v41 = vpop.f32.mrb[5].mxu1  ;;  %v2402_v29 = vrot.slane %v2394_v38, %v4656_v9 }
 0x204   :  { %v2193_v21 = vadd.f32 %v2192_v41, %v219_v7  ;;  %v2194_v19 = vpop.f32.mrb[6].mxu1 }
 0x205   :  { %v2195_v3 = vpop.f32.mrb[7].mxu1 }
 0x206   :  { %v2395_v20 = vcombine.low %v2191_v24, %v2193_v21 }
 0x208   :  { %v2409_v13 = vrot.slane %v2395_v20, %v4656_v9 }
 0x20a   :  { %v2410_v4 = vcombine.low %v2402_v29, %v2409_v13 }
 0x20c   :  { %2450 = vst [vmem:[#allocation2 + $0x8] sm:$0xff] %v2410_v4 }
 0x250   :  { %v2231_v40 = vpop.f32.mrb[8].mxu0 }
 0x251   :  { %v2232_v22 = vadd.f32 %v2231_v40, %v219_v7  ;;  %v2233_v28 = vpop.f32.mrb[9].mxu0 }
 0x252   :  { %v2234_v39 = vadd.f32 %v2233_v28, %v219_v7  ;;  %v2235_v26 = vpop.f32.mrb[10].mxu0 }
 0x253   :  { %v2236_v48 = vpop.f32.mrb[11].mxu0 }
 0x254   :  { %v2411_v0 = vcombine.low %v2232_v22, %v2234_v39  ;;  %v2272_v33 = vpop.f32.mrb[8].mxu1 }
 0x255   :  { %v2273_v62 = vadd.f32 %v2272_v33, %v219_v7  ;;  %v2274_v49 = vpop.f32.mrb[9].mxu1 }
 0x256   :  { %v2275_v53 = vadd.f32 %v2274_v49, %v219_v7  ;;  %v2276_v18 = vpop.f32.mrb[10].mxu1  ;;  %v2419_v52 = vrot.slane %v2411_v0, %v4656_v9 }
 0x257   :  { %v2277_v8 = vpop.f32.mrb[11].mxu1 }
 0x258   :  { %v2412_v10 = vcombine.low %v2273_v62, %v2275_v53 }
 0x25a   :  { %v2426_v60 = vrot.slane %v2412_v10, %v4656_v9 }
 0x25c   :  { %v2427_v57 = vcombine.low %v2419_v52, %v2426_v60 }
 0x25e   :  { %2451 = vst [vmem:[#allocation2 + $0x10] sm:$0xff] %v2427_v57 }
 0x2a3   :  { %v2313_v46 = vpop.f32.mrb[12].mxu0 }
 0x2a4   :  { %v2314_v14 = vadd.f32 %v2313_v46, %v219_v7  ;;  %v2315_v11 = vpop.f32.mrb[13].mxu0 }
 0x2a5   :  { %v2316_v47 = vadd.f32 %v2315_v11, %v219_v7  ;;  %v2317_v42 = vpop.f32.mrb[14].mxu0 }
 0x2a6   :  { %v2318_v58 = vpop.f32.mrb[15].mxu0 }
 0x2a7   :  { %v2428_v16 = vcombine.low %v2314_v14, %v2316_v47 }
 0x2a8   :  { %v2354_v55 = vpop.f32.mrb[12].mxu1 }
 0x2a9   :  { %v2355_v35 = vadd.f32 %v2354_v55, %v219_v7  ;;  %v2356_v23 = vpop.f32.mrb[13].mxu1  ;;  %v2436_v31 = vrot.slane %v2428_v16, %v4656_v9 }
 0x2aa   :  { %v2357_v44 = vadd.f32 %v2356_v23, %v219_v7  ;;  %v2358_v15 = vpop.f32.mrb[14].mxu1 }
 0x2ab   :  { %v2359_v12 = vpop.f32.mrb[15].mxu1 }
 0x2ac   :  { %v2429_v17 = vcombine.low %v2355_v35, %v2357_v44 }
 0x2ae   :  { %v2443_v50 = vrot.slane %v2429_v17, %v4656_v9 }
 0x2b0   :  { %v2444_v2 = vcombine.low %v2436_v31, %v2443_v50 }
 0x2b2   :  { %2452 = vst [vmem:[#allocation2 + $0x18] sm:$0xff] %v2444_v2 }
 0x2b3   :  { %2515 = shalt.err (!%p2512_p4)
}
 0x2b4   :  { %s2516_s24 = scalar_lea.hbm %s4683_s5, 512 }
 0x2b5   :  { %p2517_p5 = scmp.ne.s32.totalorder %s4683_s5, %s2516_s24  ;;  %p2520_p6 = scmp.lt.u32.totalorder %s2516_s24, %s4683_s5 }
 0x2b7   :  { %p2522_p7 = pnand %p2520_p6, %p2517_p5 }
 0x2b9   :  { %2525 = shalt.err (!%p2522_p7)
}
 0x2ba   :  { %2462 = dma.vmem_to_hbm [thread:$0]  %s2460_s20, 512, %s4683_s5, [#allocation3]  }
 0x2bb   :  { %2526 = dma.done.wait [#allocation3], 512  }
 0x2bc   :  { %2527 = vsyncadd [#allocation3], 4294966784 }
 0x2bd   :  { %2466 = vsyncpa [#allocation3], 1 }

</bundles_post_ra>
